<compile_context>
chip_gen: v6e
topology: v6e:2x2x1
jax: 0.10.0
libtpu: 0.0.40
codegen_flags: <defaults>
</compile_context>

<pallas_src>
import functools

import jax
import jax.numpy as jnp
from jax.experimental import pallas as pl
from jax.experimental.pallas import tpu as pltpu


# --------------------------------------------------------------------------- helpers

def _ln(x, g, b, eps):
    mean = jnp.mean(x, axis=-1, keepdims=True)
    var = jnp.mean(jnp.square(x - mean), axis=-1, keepdims=True)
    return (x - mean) * jax.lax.rsqrt(var + eps) * g + b


def _bf16(x):
    return x.astype(jnp.bfloat16)


# --------------------------------------------------------------------------- kernels

def _prep_tokens_kernel(patches_ref, pw_ref, pb_ref, cls_ref, reg_ref,
                        pos_cls_ref, pos_patch_ref, o_ref, *, num_reg):
    """Patch-embed (conv k=p,s=p as matmul) + cls/register/pos token assembly.

    Writes the three token groups into disjoint sublane slices of o_ref
    (no sublane-axis concatenate copy)."""
    pe = jnp.dot(_bf16(patches_ref[0]), pw_ref[...],
                 preferred_element_type=jnp.float32) + pb_ref[...]           # (N, D)
    o_ref[0, 0:1, :] = (cls_ref[...] + pos_cls_ref[...]).astype(o_ref.dtype)
    o_ref[0, 1:1 + num_reg, :] = reg_ref[...].astype(o_ref.dtype)
    o_ref[0, 1 + num_reg:, :] = (pe + pos_patch_ref[...]).astype(o_ref.dtype)


def _encoder_lp_kernel(x_in_ref, ln1_g, ln1_b, qkv_w, qkv_b, proj_w, proj_b,
                       ln2_g, ln2_b, fc1_w, fc1_b, fc2_w, fc2_b,
                       lp_w, lp_b, out_ref,
                       carry, cls_acc, patch_acc,
                       *, heads, num_reg, depth, eps):
    """One grid step == one transformer layer for one batch block.

    carry (B*T, D) f32 scratch holds the token slab across the depth axis;
    cls_acc / patch_acc accumulate per-layer features for the lp head."""
    l = pl.program_id(1)
    bb, T, D = x_in_ref.shape
    dh = D // heads
    BT = bb * T
    R1 = 1 + num_reg

    # ---- layer 0: load tokens into the VMEM carry, seed feature accumulators
    @pl.when(l == 0)
    def _():
        x0 = x_in_ref[...].astype(jnp.float32)                               # (bb, T, D)
        carry[...] = x0.reshape(BT, D)
        cls_acc[...] = x0[:, 0, :]
        patch_acc[...] = jnp.mean(x0[:, R1:, :], axis=1)

    x = carry[...]                                                           # (BT, D) f32

    # ---- attention sub-block (pre-norm, residual) ----------------------------
    h = _ln(x, ln1_g[0], ln1_b[0], eps)
    qkv = jnp.dot(_bf16(h), qkv_w[0],
                  preferred_element_type=jnp.float32) + qkv_b[0]             # (BT, 3D)
    qkv_bf = _bf16(qkv)                                                      # single hoisted cast

    def head_batch(base):
        # gather per-head slices into one head-batched operand (bb*H, T, dh)
        parts = [qkv_bf[:, base + hd * dh: base + (hd + 1) * dh].reshape(bb, T, dh)
                 for hd in range(heads)]
        return jnp.stack(parts, axis=1).reshape(bb * heads, T, dh)

    # NOTE: 1/sqrt(dh) softmax scale is pre-folded into the Q slice of qkv_w.
    q = head_batch(0)
    k = head_batch(D)
    v = head_batch(2 * D)

    s = jnp.einsum('bqd,bkd->bqk', q, k,
                   preferred_element_type=jnp.float32)                       # (bb*H, T, T)
    s = s - jnp.max(s, axis=-1, keepdims=True)
    p = jnp.exp(s)
    p = p * pl.reciprocal(jnp.sum(p, axis=-1, keepdims=True), approx=True)
    o = jnp.einsum('bqk,bkd->bqd', _bf16(p), v,
                   preferred_element_type=jnp.float32)                       # (bb*H, T, dh)

    o4 = o.reshape(bb, heads, T, dh)
    o_merged = jnp.concatenate([o4[:, hd] for hd in range(heads)], axis=-1)  # (bb, T, D)
    o_merged = o_merged.reshape(BT, D)
    x = x + jnp.dot(_bf16(o_merged), proj_w[0],
                    preferred_element_type=jnp.float32) + proj_b[0]

    # ---- MLP sub-block (pre-norm, residual) ----------------------------------
    h = _ln(x, ln2_g[0], ln2_b[0], eps)
    h = jnp.dot(_bf16(h), fc1_w[0],
                preferred_element_type=jnp.float32) + fc1_b[0]
    # TODO(synk): torch nn.GELU default is exact erf; tanh approximation used here.
    h = jax.nn.gelu(h, approximate=True)
    h = jnp.dot(_bf16(h), fc2_w[0],
                preferred_element_type=jnp.float32) + fc2_b[0]
    x = x + h

    carry[...] = x
    xr = x.reshape(bb, T, D)
    cls_acc[...] = cls_acc[...] + xr[:, 0, :]
    patch_acc[...] = patch_acc[...] + jnp.mean(xr[:, R1:, :], axis=1)

    # ---- last layer: synthetic lp head (mean-pooled features -> linear) ------
    @pl.when(l == depth - 1)
    def _():
        inv = 1.0 / float(depth + 1)
        feat = jnp.concatenate([cls_acc[...], patch_acc[...]], axis=-1) * inv  # (bb, 2D)
        out_ref[...] = (jnp.dot(_bf16(feat), lp_w[...],
                                preferred_element_type=jnp.float32) + lp_b[...]
                        ).astype(out_ref.dtype)


# --------------------------------------------------------------------------- wrappers

def prepare_tokens(patches, params, *, num_reg):
    B, N, K = patches.shape
    D = params["cls"].shape[-1]
    T = 1 + num_reg + N
    pos_cls, pos_patch = params["pos"][:1], params["pos"][1:]
    return pl.pallas_call(
        functools.partial(_prep_tokens_kernel, num_reg=num_reg),
        out_shape=jax.ShapeDtypeStruct((B, T, D), jnp.float32),
        grid=(B,),
        in_specs=[pl.BlockSpec((1, N, K), lambda b: (b, 0, 0)),
                  pl.BlockSpec((K, D), lambda b: (0, 0)),
                  pl.BlockSpec((1, D), lambda b: (0, 0)),
                  pl.BlockSpec((1, D), lambda b: (0, 0)),
                  pl.BlockSpec((num_reg, D), lambda b: (0, 0)),
                  pl.BlockSpec((1, D), lambda b: (0, 0)),
                  pl.BlockSpec((N, D), lambda b: (0, 0))],
        out_specs=pl.BlockSpec((1, T, D), lambda b: (b, 0, 0)),
        compiler_params=pltpu.CompilerParams(dimension_semantics=("parallel",)),
    )(patches, params["patch_w"], params["patch_b"], params["cls"],
      params["reg"], pos_cls, pos_patch)


def encoder_and_lp(x, params, *, heads, num_reg, eps=1e-6):
    """Whole encoder stack + lp head in one pallas_call (weights streamed by depth)."""
    B, T, D = x.shape
    blk = params["blocks"]
    depth = blk["ln1_g"].shape[0]
    cpad = params["lp_w"].shape[1]

    # Fold as many images per grid block as possible (raises MXU row occupancy);
    # at toy shapes this is the whole batch (single batch block).
    img_per_blk = min(B, max(1, 128 // T))
    while B % img_per_blk:
        img_per_blk -= 1
    nb = B // img_per_blk
    BTb = img_per_blk * T

    order = ["ln1_g", "ln1_b", "qkv_w", "qkv_b", "proj_w", "proj_b",
             "ln2_g", "ln2_b", "fc1_w", "fc1_b", "fc2_w", "fc2_b"]
    weights = [blk[k] for k in order]

    def w_spec(a):   # per-layer weight block, streamed along the depth axis
        return pl.BlockSpec((1,) + a.shape[1:], lambda b, l: (l, 0, 0))

    def const_spec(a):   # grid-invariant block (loaded once, revisited)
        return pl.BlockSpec(a.shape, lambda b, l: (0,) * a.ndim)

    return pl.pallas_call(
        functools.partial(_encoder_lp_kernel, heads=heads, num_reg=num_reg,
                          depth=depth, eps=eps),
        out_shape=jax.ShapeDtypeStruct((B, cpad), jnp.float32),
        grid=(nb, depth),
        in_specs=[pl.BlockSpec((img_per_blk, T, D), lambda b, l: (b, 0, 0))]
                 + [w_spec(a) for a in weights]
                 + [const_spec(params["lp_w"]), const_spec(params["lp_b"])],
        out_specs=pl.BlockSpec((img_per_blk, cpad), lambda b, l: (b, 0)),
        scratch_shapes=[pltpu.VMEM((BTb, D), jnp.float32),          # token-slab carry
                        pltpu.VMEM((img_per_blk, D), jnp.float32),  # cls feature sum
                        pltpu.VMEM((img_per_blk, D), jnp.float32)], # patch feature sum
        compiler_params=pltpu.CompilerParams(
            dimension_semantics=("parallel", "arbitrary")),
    )(x, *weights, params["lp_w"], params["lp_b"])


# --------------------------------------------------------------------------- model

def make_params(key, *, in_chans, patch, dim, depth, heads, mlp_ratio,
                num_reg, num_patches, num_classes):
    keys = iter(jax.random.split(key, 16))

    def nrm(shape, scale=0.02):
        return scale * jax.random.normal(next(keys), shape, jnp.float32)

    dh = dim // heads
    cpad = max(128, ((num_classes + 127) // 128) * 128)       # lane-dense head output

    qkv_w = nrm((depth, dim, 3 * dim))
    # fold the 1/sqrt(dh) attention scale into the Q slice (exact)
    qkv_w = qkv_w.at[:, :, :dim].multiply(dh ** -0.5)

    return {
        "patch_w": nrm((in_chans * patch * patch, dim)).astype(jnp.bfloat16),
        "patch_b": jnp.zeros((1, dim), jnp.float32),
        "cls": nrm((1, dim)),
        "reg": nrm((num_reg, dim)),
        "pos": nrm((1 + num_patches, dim)),
        "lp_w": jnp.concatenate(
            [nrm((2 * dim, num_classes)),
             jnp.zeros((2 * dim, cpad - num_classes), jnp.float32)],
            axis=1).astype(jnp.bfloat16),
        "lp_b": jnp.zeros((1, cpad), jnp.float32),
        "blocks": {   # per-layer weights stacked along a leading depth axis
            "ln1_g": jnp.ones((depth, 1, dim), jnp.float32),
            "ln1_b": jnp.zeros((depth, 1, dim), jnp.float32),
            "qkv_w": qkv_w.astype(jnp.bfloat16),
            "qkv_b": jnp.zeros((depth, 1, 3 * dim), jnp.float32),
            "proj_w": nrm((depth, dim, dim)).astype(jnp.bfloat16),
            "proj_b": jnp.zeros((depth, 1, dim), jnp.float32),
            "ln2_g": jnp.ones((depth, 1, dim), jnp.float32),
            "ln2_b": jnp.zeros((depth, 1, dim), jnp.float32),
            "fc1_w": nrm((depth, dim, mlp_ratio * dim)).astype(jnp.bfloat16),
            "fc1_b": jnp.zeros((depth, 1, mlp_ratio * dim), jnp.float32),
            "fc2_w": nrm((depth, mlp_ratio * dim, dim)).astype(jnp.bfloat16),
            "fc2_b": jnp.zeros((depth, 1, dim), jnp.float32),
        },
    }


def unic_forward(params, image, *, patch, heads, num_reg, num_classes):
    B, C, H, W = image.shape
    gh, gw = H // patch, W // patch
    N = gh * gw

    # prepare_tokens_with_masks: im2col (host layout plumbing) + fused
    # patch-embed / cls / register / pos-embed kernel.
    patches = image.reshape(B, C, gh, patch, gw, patch)
    patches = patches.transpose(0, 2, 4, 1, 3, 5).reshape(B, N, C * patch * patch)
    x = prepare_tokens(patches, params, num_reg=num_reg)                 # (B, T, D)

    # UNIC.forward: encoder depth loop + per-layer cls/patch feature collection
    # + lp head — all fused in one weight-streaming kernel.
    # TODO(synk): `lp` is an injected module in the reference; synthesized here
    # as mean-pooled per-layer cls/patch features followed by a linear head.
    logits = encoder_and_lp(x, params, heads=heads, num_reg=num_reg)     # (B, cpad)
    return logits[:, :num_classes]                                       # drop lane padding


# --------------------------------------------------------------------------- main

if __name__ == "__main__":
    key = jax.random.PRNGKey(0)
    pkey, ikey = jax.random.split(key)

    # D = 128 => lane-dense activations; T = 1 + 3 reg + 4 patches = 8.
    B, C, HW, patch = 2, 3, 16, 8
    dim, depth, heads, num_reg, mlp_ratio, num_classes = 128, 2, 2, 3, 4, 10
    num_patches = (HW // patch) ** 2

    params = make_params(pkey, in_chans=C, patch=patch, dim=dim, depth=depth,
                         heads=heads, mlp_ratio=mlp_ratio, num_reg=num_reg,
                         num_patches=num_patches, num_classes=num_classes)
    image = jax.random.normal(ikey, (B, C, HW, HW), jnp.float32)

    fwd = jax.jit(functools.partial(unic_forward, patch=patch, heads=heads,
                                    num_reg=num_reg, num_classes=num_classes))
    out = fwd(params, image)
    jax.block_until_ready(out)
    assert out.shape == (B, num_classes) and out.dtype == jnp.float32
    print("KERNEL_OK")
</pallas_src>

<mosaic_0001>
module attributes {stable_mosaic.version = 11 : i64} {
  func.func @_prep_tokens_kernel(%arg0: i32, %arg1: memref<1x4x192xf32, #tpu.memory_space<vmem>>, %arg2: memref<192x128xbf16, #tpu.memory_space<vmem>>, %arg3: memref<1x128xf32, #tpu.memory_space<vmem>>, %arg4: memref<1x128xf32, #tpu.memory_space<vmem>>, %arg5: memref<3x128xf32, #tpu.memory_space<vmem>>, %arg6: memref<1x128xf32, #tpu.memory_space<vmem>>, %arg7: memref<4x128xf32, #tpu.memory_space<vmem>>, %arg8: memref<1x8x128xf32, #tpu.memory_space<vmem>>) attributes {dimension_semantics = [#tpu.dimension_semantics<parallel>], iteration_bounds = array<i64: 2>, scalar_prefetch = 0 : i64, scratch_operands = 0 : i64, tpu.core_type = #tpu.core_type<tc>, window_params = [{transform_indices = @transform_0, window_bounds = array<i64: 1, 4, 192>}, {pipeline_mode = #tpu.pipeline_mode<synchronous>, transform_indices = @transform_1, window_bounds = array<i64: 192, 128>}, {pipeline_mode = #tpu.pipeline_mode<synchronous>, transform_indices = @transform_2, window_bounds = array<i64: 1, 128>}, {pipeline_mode = #tpu.pipeline_mode<synchronous>, transform_indices = @transform_3, window_bounds = array<i64: 1, 128>}, {pipeline_mode = #tpu.pipeline_mode<synchronous>, transform_indices = @transform_4, window_bounds = array<i64: 3, 128>}, {pipeline_mode = #tpu.pipeline_mode<synchronous>, transform_indices = @transform_5, window_bounds = array<i64: 1, 128>}, {pipeline_mode = #tpu.pipeline_mode<synchronous>, transform_indices = @transform_6, window_bounds = array<i64: 4, 128>}, {transform_indices = @transform_7, window_bounds = array<i64: 1, 8, 128>}]} {
    %c0 = arith.constant 0 : index
    %c0_0 = arith.constant 0 : index
    %c0_1 = arith.constant 0 : index
    %0 = vector.load %arg1[%c0, %c0_0, %c0_1] : memref<1x4x192xf32, #tpu.memory_space<vmem>>, vector<1x4x192xf32>
    %1 = vector.shape_cast %0 : vector<1x4x192xf32> to vector<4x192xf32>
    %2 = arith.truncf %1 : vector<4x192xf32> to vector<4x192xbf16>
    %c0_2 = arith.constant 0 : index
    %c0_3 = arith.constant 0 : index
    %3 = vector.load %arg2[%c0_2, %c0_3] : memref<192x128xbf16, #tpu.memory_space<vmem>>, vector<192x128xbf16>
    %cst = arith.constant dense<0.000000e+00> : vector<4x128xf32>
    %4 = tpu.matmul %2, %3, %cst {dimension_numbers = #tpu.dot_dimension_numbers<[1], [0], [0], [1], [0, 0, 1, 1], [], []>} : vector<4x192xbf16>, vector<192x128xbf16>, vector<4x128xf32> -> vector<4x128xf32>
    %c0_4 = arith.constant 0 : index
    %c0_5 = arith.constant 0 : index
    %5 = vector.load %arg3[%c0_4, %c0_5] : memref<1x128xf32, #tpu.memory_space<vmem>>, vector<1x128xf32>
    %6 = vector.broadcast %5 : vector<1x128xf32> to vector<4x128xf32>
    %7 = arith.addf %4, %6 : vector<4x128xf32>
    %c0_6 = arith.constant 0 : index
    %c0_7 = arith.constant 0 : index
    %8 = vector.load %arg4[%c0_6, %c0_7] : memref<1x128xf32, #tpu.memory_space<vmem>>, vector<1x128xf32>
    %c0_8 = arith.constant 0 : index
    %c0_9 = arith.constant 0 : index
    %9 = vector.load %arg6[%c0_8, %c0_9] : memref<1x128xf32, #tpu.memory_space<vmem>>, vector<1x128xf32>
    %10 = arith.addf %8, %9 : vector<1x128xf32>
    %c0_10 = arith.constant 0 : index
    %c0_11 = arith.constant 0 : index
    %c0_12 = arith.constant 0 : index
    %11 = vector.load %arg8[%c0_10, %c0_11, %c0_12] : memref<1x8x128xf32, #tpu.memory_space<vmem>>, vector<1x1x128xf32>
    %12 = vector.shape_cast %11 : vector<1x1x128xf32> to vector<1x128xf32>
    %13 = vector.shape_cast %10 : vector<1x128xf32> to vector<1x1x128xf32>
    tpu.vector_store %arg8[%c0_10, %c0_11, %c0_12], %13 {strides = array<i32>} : memref<1x8x128xf32, #tpu.memory_space<vmem>>, vector<1x1x128xf32>,
    %c0_13 = arith.constant 0 : index
    %c0_14 = arith.constant 0 : index
    %14 = vector.load %arg5[%c0_13, %c0_14] : memref<3x128xf32, #tpu.memory_space<vmem>>, vector<3x128xf32>
    %c0_15 = arith.constant 0 : index
    %c1 = arith.constant 1 : index
    %c0_16 = arith.constant 0 : index
    %15 = vector.load %arg8[%c0_15, %c1, %c0_16] : memref<1x8x128xf32, #tpu.memory_space<vmem>>, vector<1x3x128xf32>
    %16 = vector.shape_cast %15 : vector<1x3x128xf32> to vector<3x128xf32>
    %17 = vector.shape_cast %14 : vector<3x128xf32> to vector<1x3x128xf32>
    tpu.vector_store %arg8[%c0_15, %c1, %c0_16], %17 {strides = array<i32>} : memref<1x8x128xf32, #tpu.memory_space<vmem>>, vector<1x3x128xf32>,
    %c0_17 = arith.constant 0 : index
    %c0_18 = arith.constant 0 : index
    %18 = vector.load %arg7[%c0_17, %c0_18] : memref<4x128xf32, #tpu.memory_space<vmem>>, vector<4x128xf32>
    %19 = arith.addf %7, %18 : vector<4x128xf32>
    %c0_19 = arith.constant 0 : index
    %c4 = arith.constant 4 : index
    %c0_20 = arith.constant 0 : index
    %20 = vector.load %arg8[%c0_19, %c4, %c0_20] : memref<1x8x128xf32, #tpu.memory_space<vmem>>, vector<1x4x128xf32>
    %21 = vector.shape_cast %20 : vector<1x4x128xf32> to vector<4x128xf32>
    %22 = vector.shape_cast %19 : vector<4x128xf32> to vector<1x4x128xf32>
    tpu.vector_store %arg8[%c0_19, %c4, %c0_20], %22 {strides = array<i32>} : memref<1x8x128xf32, #tpu.memory_space<vmem>>, vector<1x4x128xf32>,
    return
  }
  func.func @transform_0(%arg0: i32) -> (i32, i32, i32) {
    %c0_i32 = arith.constant 0 : i32
    %c0_i32_0 = arith.constant 0 : i32
    %c0_i32_1 = arith.constant 0 : i32
    return %arg0, %c0_i32, %c0_i32_0 : i32, i32, i32
  }
  func.func @transform_1(%arg0: i32) -> (i32, i32) {
    %c0_i32 = arith.constant 0 : i32
    %c0_i32_0 = arith.constant 0 : i32
    %c0_i32_1 = arith.constant 0 : i32
    return %c0_i32, %c0_i32_0 : i32, i32
  }
  func.func @transform_2(%arg0: i32) -> (i32, i32) {
    %c0_i32 = arith.constant 0 : i32
    %c0_i32_0 = arith.constant 0 : i32
    %c0_i32_1 = arith.constant 0 : i32
    return %c0_i32, %c0_i32_0 : i32, i32
  }
  func.func @transform_3(%arg0: i32) -> (i32, i32) {
    %c0_i32 = arith.constant 0 : i32
    %c0_i32_0 = arith.constant 0 : i32
    %c0_i32_1 = arith.constant 0 : i32
    return %c0_i32, %c0_i32_0 : i32, i32
  }
  func.func @transform_4(%arg0: i32) -> (i32, i32) {
    %c0_i32 = arith.constant 0 : i32
    %c0_i32_0 = arith.constant 0 : i32
    %c0_i32_1 = arith.constant 0 : i32
    return %c0_i32, %c0_i32_0 : i32, i32
  }
  func.func @transform_5(%arg0: i32) -> (i32, i32) {
    %c0_i32 = arith.constant 0 : i32
    %c0_i32_0 = arith.constant 0 : i32
    %c0_i32_1 = arith.constant 0 : i32
    return %c0_i32, %c0_i32_0 : i32, i32
  }
  func.func @transform_6(%arg0: i32) -> (i32, i32) {
    %c0_i32 = arith.constant 0 : i32
    %c0_i32_0 = arith.constant 0 : i32
    %c0_i32_1 = arith.constant 0 : i32
    return %c0_i32, %c0_i32_0 : i32, i32
  }
  func.func @transform_7(%arg0: i32) -> (i32, i32, i32) {
    %c0_i32 = arith.constant 0 : i32
    %c0_i32_0 = arith.constant 0 : i32
    %c0_i32_1 = arith.constant 0 : i32
    return %arg0, %c0_i32, %c0_i32_0 : i32, i32, i32
  }
}

module attributes {stable_mosaic.version = 11 : i64} {
  func.func @_encoder_lp_kernel(%arg0: i32, %arg1: i32, %arg2: memref<2x8x128xf32, #tpu.memory_space<vmem>>, %arg3: memref<1x1x128xf32, #tpu.memory_space<vmem>>, %arg4: memref<1x1x128xf32, #tpu.memory_space<vmem>>, %arg5: memref<1x128x384xbf16, #tpu.memory_space<vmem>>, %arg6: memref<1x1x384xf32, #tpu.memory_space<vmem>>, %arg7: memref<1x128x128xbf16, #tpu.memory_space<vmem>>, %arg8: memref<1x1x128xf32, #tpu.memory_space<vmem>>, %arg9: memref<1x1x128xf32, #tpu.memory_space<vmem>>, %arg10: memref<1x1x128xf32, #tpu.memory_space<vmem>>, %arg11: memref<1x128x512xbf16, #tpu.memory_space<vmem>>, %arg12: memref<1x1x512xf32, #tpu.memory_space<vmem>>, %arg13: memref<1x512x128xbf16, #tpu.memory_space<vmem>>, %arg14: memref<1x1x128xf32, #tpu.memory_space<vmem>>, %arg15: memref<256x128xbf16, #tpu.memory_space<vmem>>, %arg16: memref<1x128xf32, #tpu.memory_space<vmem>>, %arg17: memref<2x128xf32, #tpu.memory_space<vmem>>, %arg18: memref<16x128xf32, #tpu.memory_space<vmem>>, %arg19: memref<2x128xf32, #tpu.memory_space<vmem>>, %arg20: memref<2x128xf32, #tpu.memory_space<vmem>>) attributes {dimension_semantics = [#tpu.dimension_semantics<parallel>, #tpu.dimension_semantics<arbitrary>], iteration_bounds = array<i64: 1, 2>, scalar_prefetch = 0 : i64, scratch_operands = 3 : i64, tpu.core_type = #tpu.core_type<tc>, window_params = [{transform_indices = @transform_0, window_bounds = array<i64: 2, 8, 128>}, {transform_indices = @transform_1, window_bounds = array<i64: 1, 1, 128>}, {transform_indices = @transform_2, window_bounds = array<i64: 1, 1, 128>}, {transform_indices = @transform_3, window_bounds = array<i64: 1, 128, 384>}, {transform_indices = @transform_4, window_bounds = array<i64: 1, 1, 384>}, {transform_indices = @transform_5, window_bounds = array<i64: 1, 128, 128>}, {transform_indices = @transform_6, window_bounds = array<i64: 1, 1, 128>}, {transform_indices = @transform_7, window_bounds = array<i64: 1, 1, 128>}, {transform_indices = @transform_8, window_bounds = array<i64: 1, 1, 128>}, {transform_indices = @transform_9, window_bounds = array<i64: 1, 128, 512>}, {transform_indices = @transform_10, window_bounds = array<i64: 1, 1, 512>}, {transform_indices = @transform_11, window_bounds = array<i64: 1, 512, 128>}, {transform_indices = @transform_12, window_bounds = array<i64: 1, 1, 128>}, {pipeline_mode = #tpu.pipeline_mode<synchronous>, transform_indices = @transform_13, window_bounds = array<i64: 256, 128>}, {pipeline_mode = #tpu.pipeline_mode<synchronous>, transform_indices = @transform_14, window_bounds = array<i64: 1, 128>}, {transform_indices = @transform_15, window_bounds = array<i64: 2, 128>}]} {
    %c0_i32 = arith.constant 0 : i32
    %0 = arith.cmpi eq, %arg1, %c0_i32 : i32
    %1 = arith.extui %0 : i1 to i32
    %c0_i32_0 = arith.constant 0 : i32
    %2 = arith.cmpi ne, %1, %c0_i32_0 : i32
    scf.if %2 {
      %c0_72 = arith.constant 0 : index
      %c0_73 = arith.constant 0 : index
      %c0_74 = arith.constant 0 : index
      %165 = vector.load %arg2[%c0_72, %c0_73, %c0_74] : memref<2x8x128xf32, #tpu.memory_space<vmem>>, vector<2x8x128xf32>
      %166 = vector.shape_cast %165 : vector<2x8x128xf32> to vector<16x128xf32>
      %c0_75 = arith.constant 0 : index
      %c0_76 = arith.constant 0 : index
      %167 = vector.load %arg18[%c0_75, %c0_76] : memref<16x128xf32, #tpu.memory_space<vmem>>, vector<16x128xf32>
      tpu.vector_store %arg18[%c0_75, %c0_76], %166 {strides = array<i32>} : memref<16x128xf32, #tpu.memory_space<vmem>>, vector<16x128xf32>,
      %168 = vector.extract_strided_slice %165 {offsets = [0, 0, 0], sizes = [2, 1, 128], strides = [1, 1, 1]} : vector<2x8x128xf32> to vector<2x1x128xf32>
      %169 = vector.shape_cast %168 : vector<2x1x128xf32> to vector<2x128xf32>
      %c0_77 = arith.constant 0 : index
      %c0_78 = arith.constant 0 : index
      %170 = vector.load %arg19[%c0_77, %c0_78] : memref<2x128xf32, #tpu.memory_space<vmem>>, vector<2x128xf32>
      tpu.vector_store %arg19[%c0_77, %c0_78], %169 {strides = array<i32>} : memref<2x128xf32, #tpu.memory_space<vmem>>, vector<2x128xf32>,
      %171 = vector.extract_strided_slice %165 {offsets = [0, 4, 0], sizes = [2, 4, 128], strides = [1, 1, 1]} : vector<2x8x128xf32> to vector<2x4x128xf32>
      %cst_79 = arith.constant dense<0.000000e+00> : vector<2x128xf32>
      %172 = vector.multi_reduction <add>, %171, %cst_79 [1] : vector<2x4x128xf32> to vector<2x128xf32>
      %cst_80 = arith.constant 4.000000e+00 : f32
      %173 = vector.broadcast %cst_80 : f32 to vector<2x128xf32>
      %174 = arith.divf %172, %173 : vector<2x128xf32>
      %c0_81 = arith.constant 0 : index
      %c0_82 = arith.constant 0 : index
      %175 = vector.load %arg20[%c0_81, %c0_82] : memref<2x128xf32, #tpu.memory_space<vmem>>, vector<2x128xf32>
      tpu.vector_store %arg20[%c0_81, %c0_82], %174 {strides = array<i32>} : memref<2x128xf32, #tpu.memory_space<vmem>>, vector<2x128xf32>,
    } else {
    }
    %c0 = arith.constant 0 : index
    %c0_1 = arith.constant 0 : index
    %3 = vector.load %arg18[%c0, %c0_1] : memref<16x128xf32, #tpu.memory_space<vmem>>, vector<16x128xf32>
    %c0_2 = arith.constant 0 : index
    %c0_3 = arith.constant 0 : index
    %c0_4 = arith.constant 0 : index
    %4 = vector.load %arg3[%c0_2, %c0_3, %c0_4] : memref<1x1x128xf32, #tpu.memory_space<vmem>>, vector<1x1x128xf32>
    %5 = vector.shape_cast %4 : vector<1x1x128xf32> to vector<1x128xf32>
    %c0_5 = arith.constant 0 : index
    %c0_6 = arith.constant 0 : index
    %c0_7 = arith.constant 0 : index
    %6 = vector.load %arg4[%c0_5, %c0_6, %c0_7] : memref<1x1x128xf32, #tpu.memory_space<vmem>>, vector<1x1x128xf32>
    %7 = vector.shape_cast %6 : vector<1x1x128xf32> to vector<1x128xf32>
    %cst = arith.constant dense<0.000000e+00> : vector<16xf32>
    %8 = vector.multi_reduction <add>, %3, %cst [1] : vector<16x128xf32> to vector<16xf32>
    %9 = vector.shape_cast %8 : vector<16xf32> to vector<16x1xf32>
    %cst_8 = arith.constant 1.280000e+02 : f32
    %10 = vector.broadcast %cst_8 : f32 to vector<16x1xf32>
    %11 = arith.divf %9, %10 : vector<16x1xf32>
    %12 = vector.broadcast %11 : vector<16x1xf32> to vector<16x128xf32>
    %13 = arith.subf %3, %12 : vector<16x128xf32>
    %14 = arith.mulf %13, %13 : vector<16x128xf32>
    %cst_9 = arith.constant dense<0.000000e+00> : vector<16xf32>
    %15 = vector.multi_reduction <add>, %14, %cst_9 [1] : vector<16x128xf32> to vector<16xf32>
    %16 = vector.shape_cast %15 : vector<16xf32> to vector<16x1xf32>
    %cst_10 = arith.constant 1.280000e+02 : f32
    %17 = vector.broadcast %cst_10 : f32 to vector<16x1xf32>
    %18 = arith.divf %16, %17 : vector<16x1xf32>
    %19 = vector.broadcast %11 : vector<16x1xf32> to vector<16x128xf32>
    %20 = arith.subf %3, %19 : vector<16x128xf32>
    %cst_11 = arith.constant 9.99999997E-7 : f32
    %21 = vector.broadcast %cst_11 : f32 to vector<16x1xf32>
    %22 = arith.addf %18, %21 : vector<16x1xf32>
    %23 = math.rsqrt %22 : vector<16x1xf32>
    %24 = vector.broadcast %23 : vector<16x1xf32> to vector<16x128xf32>
    %25 = arith.mulf %20, %24 : vector<16x128xf32>
    %26 = vector.broadcast %5 : vector<1x128xf32> to vector<16x128xf32>
    %27 = arith.mulf %25, %26 : vector<16x128xf32>
    %28 = vector.broadcast %7 : vector<1x128xf32> to vector<16x128xf32>
    %29 = arith.addf %27, %28 : vector<16x128xf32>
    %30 = arith.truncf %29 : vector<16x128xf32> to vector<16x128xbf16>
    %c0_12 = arith.constant 0 : index
    %c0_13 = arith.constant 0 : index
    %c0_14 = arith.constant 0 : index
    %31 = vector.load %arg5[%c0_12, %c0_13, %c0_14] : memref<1x128x384xbf16, #tpu.memory_space<vmem>>, vector<1x128x384xbf16>
    %32 = vector.shape_cast %31 : vector<1x128x384xbf16> to vector<128x384xbf16>
    %cst_15 = arith.constant dense<0.000000e+00> : vector<16x384xf32>
    %33 = tpu.matmul %30, %32, %cst_15 {dimension_numbers = #tpu.dot_dimension_numbers<[1], [0], [0], [1], [0, 0, 1, 1], [], []>} : vector<16x128xbf16>, vector<128x384xbf16>, vector<16x384xf32> -> vector<16x384xf32>
    %c0_16 = arith.constant 0 : index
    %c0_17 = arith.constant 0 : index
    %c0_18 = arith.constant 0 : index
    %34 = vector.load %arg6[%c0_16, %c0_17, %c0_18] : memref<1x1x384xf32, #tpu.memory_space<vmem>>, vector<1x1x384xf32>
    %35 = vector.shape_cast %34 : vector<1x1x384xf32> to vector<1x384xf32>
    %36 = vector.broadcast %35 : vector<1x384xf32> to vector<16x384xf32>
    %37 = arith.addf %33, %36 : vector<16x384xf32>
    %38 = arith.truncf %37 : vector<16x384xf32> to vector<16x384xbf16>
    %39 = vector.extract_strided_slice %38 {offsets = [0, 0], sizes = [16, 64], strides = [1, 1]} : vector<16x384xbf16> to vector<16x64xbf16>
    %40 = vector.shape_cast %39 : vector<16x64xbf16> to vector<2x8x64xbf16>
    %41 = vector.extract_strided_slice %38 {offsets = [0, 64], sizes = [16, 64], strides = [1, 1]} : vector<16x384xbf16> to vector<16x64xbf16>
    %42 = vector.shape_cast %41 : vector<16x64xbf16> to vector<2x8x64xbf16>
    %43 = vector.shape_cast %40 : vector<2x8x64xbf16> to vector<2x1x8x64xbf16>
    %44 = vector.shape_cast %42 : vector<2x8x64xbf16> to vector<2x1x8x64xbf16>
    %45 = tpu.concatenate %43, %44 in 1 : vector<2x1x8x64xbf16>, vector<2x1x8x64xbf16> -> vector<2x2x8x64xbf16>
    %46 = vector.shape_cast %45 : vector<2x2x8x64xbf16> to vector<4x8x64xbf16>
    %47 = vector.extract_strided_slice %38 {offsets = [0, 128], sizes = [16, 64], strides = [1, 1]} : vector<16x384xbf16> to vector<16x64xbf16>
    %48 = vector.shape_cast %47 : vector<16x64xbf16> to vector<2x8x64xbf16>
    %49 = vector.extract_strided_slice %38 {offsets = [0, 192], sizes = [16, 64], strides = [1, 1]} : vector<16x384xbf16> to vector<16x64xbf16>
    %50 = vector.shape_cast %49 : vector<16x64xbf16> to vector<2x8x64xbf16>
    %51 = vector.shape_cast %48 : vector<2x8x64xbf16> to vector<2x1x8x64xbf16>
    %52 = vector.shape_cast %50 : vector<2x8x64xbf16> to vector<2x1x8x64xbf16>
    %53 = tpu.concatenate %51, %52 in 1 : vector<2x1x8x64xbf16>, vector<2x1x8x64xbf16> -> vector<2x2x8x64xbf16>
    %54 = vector.shape_cast %53 : vector<2x2x8x64xbf16> to vector<4x8x64xbf16>
    %55 = vector.extract_strided_slice %38 {offsets = [0, 256], sizes = [16, 64], strides = [1, 1]} : vector<16x384xbf16> to vector<16x64xbf16>
    %56 = vector.shape_cast %55 : vector<16x64xbf16> to vector<2x8x64xbf16>
    %57 = vector.extract_strided_slice %38 {offsets = [0, 320], sizes = [16, 64], strides = [1, 1]} : vector<16x384xbf16> to vector<16x64xbf16>
    %58 = vector.shape_cast %57 : vector<16x64xbf16> to vector<2x8x64xbf16>
    %59 = vector.shape_cast %56 : vector<2x8x64xbf16> to vector<2x1x8x64xbf16>
    %60 = vector.shape_cast %58 : vector<2x8x64xbf16> to vector<2x1x8x64xbf16>
    %61 = tpu.concatenate %59, %60 in 1 : vector<2x1x8x64xbf16>, vector<2x1x8x64xbf16> -> vector<2x2x8x64xbf16>
    %62 = vector.shape_cast %61 : vector<2x2x8x64xbf16> to vector<4x8x64xbf16>
    "tpu.trace_start"() <{level = 10 : i32, message = "bqd,bkd->bqk"}> : () -> ()
    %cst_19 = arith.constant dense<0.000000e+00> : vector<4x8x8xf32>
    %63 = tpu.matmul %46, %54, %cst_19 {dimension_numbers = #tpu.dot_dimension_numbers<[2], [2], [1], [1], [0, 0, 0, 1, 1, 1], [0], [0]>} : vector<4x8x64xbf16>, vector<4x8x64xbf16>, vector<4x8x8xf32> -> vector<4x8x8xf32>
    "tpu.trace_stop"() : () -> ()
    %cst_20 = arith.constant dense<0xFF800000> : vector<4x8xf32>
    %64 = vector.multi_reduction <maximumf>, %63, %cst_20 [2] : vector<4x8x8xf32> to vector<4x8xf32>
    %65 = vector.shape_cast %64 : vector<4x8xf32> to vector<4x8x1xf32>
    %66 = vector.broadcast %65 : vector<4x8x1xf32> to vector<4x8x8xf32>
    %67 = arith.subf %63, %66 : vector<4x8x8xf32>
    %68 = math.exp %67 : vector<4x8x8xf32>
    %cst_21 = arith.constant dense<0.000000e+00> : vector<4x8xf32>
    %69 = vector.multi_reduction <add>, %68, %cst_21 [2] : vector<4x8x8xf32> to vector<4x8xf32>
    %70 = vector.shape_cast %69 : vector<4x8xf32> to vector<4x8x1xf32>
    %71 = tpu.reciprocal %70 {approx = true} : vector<4x8x1xf32> -> vector<4x8x1xf32>
    %72 = vector.broadcast %71 : vector<4x8x1xf32> to vector<4x8x8xf32>
    %73 = arith.mulf %68, %72 : vector<4x8x8xf32>
    %74 = arith.truncf %73 : vector<4x8x8xf32> to vector<4x8x8xbf16>
    "tpu.trace_start"() <{level = 10 : i32, message = "bqk,bkd->bqd"}> : () -> ()
    %cst_22 = arith.constant dense<0.000000e+00> : vector<4x8x64xf32>
    %75 = tpu.matmul %74, %62, %cst_22 {dimension_numbers = #tpu.dot_dimension_numbers<[2], [1], [1], [2], [0, 0, 0, 1, 1, 2], [0], [0]>} : vector<4x8x8xbf16>, vector<4x8x64xbf16>, vector<4x8x64xf32> -> vector<4x8x64xf32>
    "tpu.trace_stop"() : () -> ()
    %76 = vector.shape_cast %75 : vector<4x8x64xf32> to vector<2x2x8x64xf32>
    %77 = vector.extract_strided_slice %76 {offsets = [0, 0, 0, 0], sizes = [2, 1, 8, 64], strides = [1, 1, 1, 1]} : vector<2x2x8x64xf32> to vector<2x1x8x64xf32>
    %78 = vector.shape_cast %77 : vector<2x1x8x64xf32> to vector<2x8x64xf32>
    %79 = vector.extract_strided_slice %76 {offsets = [0, 1, 0, 0], sizes = [2, 1, 8, 64], strides = [1, 1, 1, 1]} : vector<2x2x8x64xf32> to vector<2x1x8x64xf32>
    %80 = vector.shape_cast %79 : vector<2x1x8x64xf32> to vector<2x8x64xf32>
    %81 = tpu.concatenate %78, %80 in 2 : vector<2x8x64xf32>, vector<2x8x64xf32> -> vector<2x8x128xf32>
    %82 = vector.shape_cast %81 : vector<2x8x128xf32> to vector<16x128xf32>
    %83 = arith.truncf %82 : vector<16x128xf32> to vector<16x128xbf16>
    %c0_23 = arith.constant 0 : index
    %c0_24 = arith.constant 0 : index
    %c0_25 = arith.constant 0 : index
    %84 = vector.load %arg7[%c0_23, %c0_24, %c0_25] : memref<1x128x128xbf16, #tpu.memory_space<vmem>>, vector<1x128x128xbf16>
    %85 = vector.shape_cast %84 : vector<1x128x128xbf16> to vector<128x128xbf16>
    %cst_26 = arith.constant dense<0.000000e+00> : vector<16x128xf32>
    %86 = tpu.matmul %83, %85, %cst_26 {dimension_numbers = #tpu.dot_dimension_numbers<[1], [0], [0], [1], [0, 0, 1, 1], [], []>} : vector<16x128xbf16>, vector<128x128xbf16>, vector<16x128xf32> -> vector<16x128xf32>
    %87 = arith.addf %3, %86 : vector<16x128xf32>
    %c0_27 = arith.constant 0 : index
    %c0_28 = arith.constant 0 : index
    %c0_29 = arith.constant 0 : index
    %88 = vector.load %arg8[%c0_27, %c0_28, %c0_29] : memref<1x1x128xf32, #tpu.memory_space<vmem>>, vector<1x1x128xf32>
    %89 = vector.shape_cast %88 : vector<1x1x128xf32> to vector<1x128xf32>
    %90 = vector.broadcast %89 : vector<1x128xf32> to vector<16x128xf32>
    %91 = arith.addf %87, %90 : vector<16x128xf32>
    %c0_30 = arith.constant 0 : index
    %c0_31 = arith.constant 0 : index
    %c0_32 = arith.constant 0 : index
    %92 = vector.load %arg9[%c0_30, %c0_31, %c0_32] : memref<1x1x128xf32, #tpu.memory_space<vmem>>, vector<1x1x128xf32>
    %93 = vector.shape_cast %92 : vector<1x1x128xf32> to vector<1x128xf32>
    %c0_33 = arith.constant 0 : index
    %c0_34 = arith.constant 0 : index
    %c0_35 = arith.constant 0 : index
    %94 = vector.load %arg10[%c0_33, %c0_34, %c0_35] : memref<1x1x128xf32, #tpu.memory_space<vmem>>, vector<1x1x128xf32>
    %95 = vector.shape_cast %94 : vector<1x1x128xf32> to vector<1x128xf32>
    %cst_36 = arith.constant dense<0.000000e+00> : vector<16xf32>
    %96 = vector.multi_reduction <add>, %91, %cst_36 [1] : vector<16x128xf32> to vector<16xf32>
    %97 = vector.shape_cast %96 : vector<16xf32> to vector<16x1xf32>
    %cst_37 = arith.constant 1.280000e+02 : f32
    %98 = vector.broadcast %cst_37 : f32 to vector<16x1xf32>
    %99 = arith.divf %97, %98 : vector<16x1xf32>
    %100 = vector.broadcast %99 : vector<16x1xf32> to vector<16x128xf32>
    %101 = arith.subf %91, %100 : vector<16x128xf32>
    %102 = arith.mulf %101, %101 : vector<16x128xf32>
    %cst_38 = arith.constant dense<0.000000e+00> : vector<16xf32>
    %103 = vector.multi_reduction <add>, %102, %cst_38 [1] : vector<16x128xf32> to vector<16xf32>
    %104 = vector.shape_cast %103 : vector<16xf32> to vector<16x1xf32>
    %cst_39 = arith.constant 1.280000e+02 : f32
    %105 = vector.broadcast %cst_39 : f32 to vector<16x1xf32>
    %106 = arith.divf %104, %105 : vector<16x1xf32>
    %107 = vector.broadcast %99 : vector<16x1xf32> to vector<16x128xf32>
    %108 = arith.subf %91, %107 : vector<16x128xf32>
    %cst_40 = arith.constant 9.99999997E-7 : f32
    %109 = vector.broadcast %cst_40 : f32 to vector<16x1xf32>
    %110 = arith.addf %106, %109 : vector<16x1xf32>
    %111 = math.rsqrt %110 : vector<16x1xf32>
    %112 = vector.broadcast %111 : vector<16x1xf32> to vector<16x128xf32>
    %113 = arith.mulf %108, %112 : vector<16x128xf32>
    %114 = vector.broadcast %93 : vector<1x128xf32> to vector<16x128xf32>
    %115 = arith.mulf %113, %114 : vector<16x128xf32>
    %116 = vector.broadcast %95 : vector<1x128xf32> to vector<16x128xf32>
    %117 = arith.addf %115, %116 : vector<16x128xf32>
    %118 = arith.truncf %117 : vector<16x128xf32> to vector<16x128xbf16>
    %c0_41 = arith.constant 0 : index
    %c0_42 = arith.constant 0 : index
    %c0_43 = arith.constant 0 : index
    %119 = vector.load %arg11[%c0_41, %c0_42, %c0_43] : memref<1x128x512xbf16, #tpu.memory_space<vmem>>, vector<1x128x512xbf16>
    %120 = vector.shape_cast %119 : vector<1x128x512xbf16> to vector<128x512xbf16>
    %cst_44 = arith.constant dense<0.000000e+00> : vector<16x512xf32>
    %121 = tpu.matmul %118, %120, %cst_44 {dimension_numbers = #tpu.dot_dimension_numbers<[1], [0], [0], [1], [0, 0, 1, 1], [], []>} : vector<16x128xbf16>, vector<128x512xbf16>, vector<16x512xf32> -> vector<16x512xf32>
    %c0_45 = arith.constant 0 : index
    %c0_46 = arith.constant 0 : index
    %c0_47 = arith.constant 0 : index
    %122 = vector.load %arg12[%c0_45, %c0_46, %c0_47] : memref<1x1x512xf32, #tpu.memory_space<vmem>>, vector<1x1x512xf32>
    %123 = vector.shape_cast %122 : vector<1x1x512xf32> to vector<1x512xf32>
    %124 = vector.broadcast %123 : vector<1x512xf32> to vector<16x512xf32>
    %125 = arith.addf %121, %124 : vector<16x512xf32>
    %126 = arith.mulf %125, %125 : vector<16x512xf32>
    %127 = arith.mulf %125, %126 : vector<16x512xf32>
    %cst_48 = arith.constant 4.471500e-02 : f32
    %128 = vector.broadcast %cst_48 : f32 to vector<16x512xf32>
    %129 = arith.mulf %128, %127 : vector<16x512xf32>
    %130 = arith.addf %125, %129 : vector<16x512xf32>
    %cst_49 = arith.constant 0.797884583 : f32
    %131 = vector.broadcast %cst_49 : f32 to vector<16x512xf32>
    %132 = arith.mulf %131, %130 : vector<16x512xf32>
    %133 = math.tanh %132 : vector<16x512xf32>
    %cst_50 = arith.constant 1.000000e+00 : f32
    %134 = vector.broadcast %cst_50 : f32 to vector<16x512xf32>
    %135 = arith.addf %134, %133 : vector<16x512xf32>
    %cst_51 = arith.constant 5.000000e-01 : f32
    %136 = vector.broadcast %cst_51 : f32 to vector<16x512xf32>
    %137 = arith.mulf %136, %135 : vector<16x512xf32>
    %138 = arith.mulf %125, %137 : vector<16x512xf32>
    %139 = arith.truncf %138 : vector<16x512xf32> to vector<16x512xbf16>
    %c0_52 = arith.constant 0 : index
    %c0_53 = arith.constant 0 : index
    %c0_54 = arith.constant 0 : index
    %140 = vector.load %arg13[%c0_52, %c0_53, %c0_54] : memref<1x512x128xbf16, #tpu.memory_space<vmem>>, vector<1x512x128xbf16>
    %141 = vector.shape_cast %140 : vector<1x512x128xbf16> to vector<512x128xbf16>
    %cst_55 = arith.constant dense<0.000000e+00> : vector<16x128xf32>
    %142 = tpu.matmul %139, %141, %cst_55 {dimension_numbers = #tpu.dot_dimension_numbers<[1], [0], [0], [1], [0, 0, 1, 1], [], []>} : vector<16x512xbf16>, vector<512x128xbf16>, vector<16x128xf32> -> vector<16x128xf32>
    %c0_56 = arith.constant 0 : index
    %c0_57 = arith.constant 0 : index
    %c0_58 = arith.constant 0 : index
    %143 = vector.load %arg14[%c0_56, %c0_57, %c0_58] : memref<1x1x128xf32, #tpu.memory_space<vmem>>, vector<1x1x128xf32>
    %144 = vector.shape_cast %143 : vector<1x1x128xf32> to vector<1x128xf32>
    %145 = vector.broadcast %144 : vector<1x128xf32> to vector<16x128xf32>
    %146 = arith.addf %142, %145 : vector<16x128xf32>
    %147 = arith.addf %91, %146 : vector<16x128xf32>
    %c0_59 = arith.constant 0 : index
    %c0_60 = arith.constant 0 : index
    %148 = vector.load %arg18[%c0_59, %c0_60] : memref<16x128xf32, #tpu.memory_space<vmem>>, vector<16x128xf32>
    tpu.vector_store %arg18[%c0_59, %c0_60], %147 {strides = array<i32>} : memref<16x128xf32, #tpu.memory_space<vmem>>, vector<16x128xf32>,
    %149 = vector.shape_cast %147 : vector<16x128xf32> to vector<2x8x128xf32>
    %c0_61 = arith.constant 0 : index
    %c0_62 = arith.constant 0 : index
    %150 = vector.load %arg19[%c0_61, %c0_62] : memref<2x128xf32, #tpu.memory_space<vmem>>, vector<2x128xf32>
    %151 = vector.extract_strided_slice %149 {offsets = [0, 0, 0], sizes = [2, 1, 128], strides = [1, 1, 1]} : vector<2x8x128xf32> to vector<2x1x128xf32>
    %152 = vector.shape_cast %151 : vector<2x1x128xf32> to vector<2x128xf32>
    %153 = arith.addf %150, %152 : vector<2x128xf32>
    %c0_63 = arith.constant 0 : index
    %c0_64 = arith.constant 0 : index
    %154 = vector.load %arg19[%c0_63, %c0_64] : memref<2x128xf32, #tpu.memory_space<vmem>>, vector<2x128xf32>
    tpu.vector_store %arg19[%c0_63, %c0_64], %153 {strides = array<i32>} : memref<2x128xf32, #tpu.memory_space<vmem>>, vector<2x128xf32>,
    %c0_65 = arith.constant 0 : index
    %c0_66 = arith.constant 0 : index
    %155 = vector.load %arg20[%c0_65, %c0_66] : memref<2x128xf32, #tpu.memory_space<vmem>>, vector<2x128xf32>
    %156 = vector.extract_strided_slice %149 {offsets = [0, 4, 0], sizes = [2, 4, 128], strides = [1, 1, 1]} : vector<2x8x128xf32> to vector<2x4x128xf32>
    %cst_67 = arith.constant dense<0.000000e+00> : vector<2x128xf32>
    %157 = vector.multi_reduction <add>, %156, %cst_67 [1] : vector<2x4x128xf32> to vector<2x128xf32>
    %cst_68 = arith.constant 4.000000e+00 : f32
    %158 = vector.broadcast %cst_68 : f32 to vector<2x128xf32>
    %159 = arith.divf %157, %158 : vector<2x128xf32>
    %160 = arith.addf %155, %159 : vector<2x128xf32>
    %c0_69 = arith.constant 0 : index
    %c0_70 = arith.constant 0 : index
    %161 = vector.load %arg20[%c0_69, %c0_70] : memref<2x128xf32, #tpu.memory_space<vmem>>, vector<2x128xf32>
    tpu.vector_store %arg20[%c0_69, %c0_70], %160 {strides = array<i32>} : memref<2x128xf32, #tpu.memory_space<vmem>>, vector<2x128xf32>,
    %c1_i32 = arith.constant 1 : i32
    %162 = arith.cmpi eq, %arg1, %c1_i32 : i32
    %163 = arith.extui %162 : i1 to i32
    %c0_i32_71 = arith.constant 0 : i32
    %164 = arith.cmpi ne, %163, %c0_i32_71 : i32
    scf.if %164 {
      %c0_72 = arith.constant 0 : index
      %c0_73 = arith.constant 0 : index
      %165 = vector.load %arg19[%c0_72, %c0_73] : memref<2x128xf32, #tpu.memory_space<vmem>>, vector<2x128xf32>
      %c0_74 = arith.constant 0 : index
      %c0_75 = arith.constant 0 : index
      %166 = vector.load %arg20[%c0_74, %c0_75] : memref<2x128xf32, #tpu.memory_space<vmem>>, vector<2x128xf32>
      %167 = tpu.concatenate %165, %166 in 1 : vector<2x128xf32>, vector<2x128xf32> -> vector<2x256xf32>
      %cst_76 = arith.constant 0.333333343 : f32
      %168 = vector.broadcast %cst_76 : f32 to vector<2x256xf32>
      %169 = arith.mulf %167, %168 : vector<2x256xf32>
      %170 = arith.truncf %169 : vector<2x256xf32> to vector<2x256xbf16>
      %c0_77 = arith.constant 0 : index
      %c0_78 = arith.constant 0 : index
      %171 = vector.load %arg15[%c0_77, %c0_78] : memref<256x128xbf16, #tpu.memory_space<vmem>>, vector<256x128xbf16>
      %cst_79 = arith.constant dense<0.000000e+00> : vector<2x128xf32>
      %172 = tpu.matmul %170, %171, %cst_79 {dimension_numbers = #tpu.dot_dimension_numbers<[1], [0], [0], [1], [0, 0, 1, 1], [], []>} : vector<2x256xbf16>, vector<256x128xbf16>, vector<2x128xf32> -> vector<2x128xf32>
      %c0_80 = arith.constant 0 : index
      %c0_81 = arith.constant 0 : index
      %173 = vector.load %arg16[%c0_80, %c0_81] : memref<1x128xf32, #tpu.memory_space<vmem>>, vector<1x128xf32>
      %174 = vector.broadcast %173 : vector<1x128xf32> to vector<2x128xf32>
      %175 = arith.addf %172, %174 : vector<2x128xf32>
      %c0_82 = arith.constant 0 : index
      %c0_83 = arith.constant 0 : index
      %176 = vector.load %arg17[%c0_82, %c0_83] : memref<2x128xf32, #tpu.memory_space<vmem>>, vector<2x128xf32>
      tpu.vector_store %arg17[%c0_82, %c0_83], %175 {strides = array<i32>} : memref<2x128xf32, #tpu.memory_space<vmem>>, vector<2x128xf32>,
    } else {
    }
    return
  }
  func.func @transform_0(%arg0: i32, %arg1: i32) -> (i32, i32, i32) {
    %c0_i32 = arith.constant 0 : i32
    %c0_i32_0 = arith.constant 0 : i32
    %c0_i32_1 = arith.constant 0 : i32
    return %arg0, %c0_i32, %c0_i32_0 : i32, i32, i32
  }
  func.func @transform_1(%arg0: i32, %arg1: i32) -> (i32, i32, i32) {
    %c0_i32 = arith.constant 0 : i32
    %c0_i32_0 = arith.constant 0 : i32
    %c0_i32_1 = arith.constant 0 : i32
    return %arg1, %c0_i32, %c0_i32_0 : i32, i32, i32
  }
  func.func @transform_2(%arg0: i32, %arg1: i32) -> (i32, i32, i32) {
    %c0_i32 = arith.constant 0 : i32
    %c0_i32_0 = arith.constant 0 : i32
    %c0_i32_1 = arith.constant 0 : i32
    return %arg1, %c0_i32, %c0_i32_0 : i32, i32, i32
  }
  func.func @transform_3(%arg0: i32, %arg1: i32) -> (i32, i32, i32) {
    %c0_i32 = arith.constant 0 : i32
    %c0_i32_0 = arith.constant 0 : i32
    %c0_i32_1 = arith.constant 0 : i32
    return %arg1, %c0_i32, %c0_i32_0 : i32, i32, i32
  }
  func.func @transform_4(%arg0: i32, %arg1: i32) -> (i32, i32, i32) {
    %c0_i32 = arith.constant 0 : i32
    %c0_i32_0 = arith.constant 0 : i32
    %c0_i32_1 = arith.constant 0 : i32
    return %arg1, %c0_i32, %c0_i32_0 : i32, i32, i32
  }
  func.func @transform_5(%arg0: i32, %arg1: i32) -> (i32, i32, i32) {
    %c0_i32 = arith.constant 0 : i32
    %c0_i32_0 = arith.constant 0 : i32
    %c0_i32_1 = arith.constant 0 : i32
    return %arg1, %c0_i32, %c0_i32_0 : i32, i32, i32
  }
  func.func @transform_6(%arg0: i32, %arg1: i32) -> (i32, i32, i32) {
    %c0_i32 = arith.constant 0 : i32
    %c0_i32_0 = arith.constant 0 : i32
    %c0_i32_1 = arith.constant 0 : i32
    return %arg1, %c0_i32, %c0_i32_0 : i32, i32, i32
  }
  func.func @transform_7(%arg0: i32, %arg1: i32) -> (i32, i32, i32) {
    %c0_i32 = arith.constant 0 : i32
    %c0_i32_0 = arith.constant 0 : i32
    %c0_i32_1 = arith.constant 0 : i32
    return %arg1, %c0_i32, %c0_i32_0 : i32, i32, i32
  }
  func.func @transform_8(%arg0: i32, %arg1: i32) -> (i32, i32, i32) {
    %c0_i32 = arith.constant 0 : i32
    %c0_i32_0 = arith.constant 0 : i32
    %c0_i32_1 = arith.constant 0 : i32
    return %arg1, %c0_i32, %c0_i32_0 : i32, i32, i32
  }
  func.func @transform_9(%arg0: i32, %arg1: i32) -> (i32, i32, i32) {
    %c0_i32 = arith.constant 0 : i32
    %c0_i32_0 = arith.constant 0 : i32
    %c0_i32_1 = arith.constant 0 : i32
    return %arg1, %c0_i32, %c0_i32_0 : i32, i32, i32
  }
  func.func @transform_10(%arg0: i32, %arg1: i32) -> (i32, i32, i32) {
    %c0_i32 = arith.constant 0 : i32
    %c0_i32_0 = arith.constant 0 : i32
    %c0_i32_1 = arith.constant 0 : i32
    return %arg1, %c0_i32, %c0_i32_0 : i32, i32, i32
  }
  func.func @transform_11(%arg0: i32, %arg1: i32) -> (i32, i32, i32) {
    %c0_i32 = arith.constant 0 : i32
    %c0_i32_0 = arith.constant 0 : i32
    %c0_i32_1 = arith.constant 0 : i32
    return %arg1, %c0_i32, %c0_i32_0 : i32, i32, i32
  }
  func.func @transform_12(%arg0: i32, %arg1: i32) -> (i32, i32, i32) {
    %c0_i32 = arith.constant 0 : i32
    %c0_i32_0 = arith.constant 0 : i32
    %c0_i32_1 = arith.constant 0 : i32
    return %arg1, %c0_i32, %c0_i32_0 : i32, i32, i32
  }
  func.func @transform_13(%arg0: i32, %arg1: i32) -> (i32, i32) {
    %c0_i32 = arith.constant 0 : i32
    %c0_i32_0 = arith.constant 0 : i32
    %c0_i32_1 = arith.constant 0 : i32
    return %c0_i32, %c0_i32_0 : i32, i32
  }
  func.func @transform_14(%arg0: i32, %arg1: i32) -> (i32, i32) {
    %c0_i32 = arith.constant 0 : i32
    %c0_i32_0 = arith.constant 0 : i32
    %c0_i32_1 = arith.constant 0 : i32
    return %c0_i32, %c0_i32_0 : i32, i32
  }
  func.func @transform_15(%arg0: i32, %arg1: i32) -> (i32, i32) {
    %c0_i32 = arith.constant 0 : i32
    %c0_i32_0 = arith.constant 0 : i32
    return %arg0, %c0_i32 : i32, i32
  }
}

</mosaic_0001>

<bundles_post_ra>
// kernel: unic_forward.2
= control target key start
LH: loop header
LB: loop body
LE: loop exit
PB: predicated region body
PF: predicated region fallthrough
CT: control target
= control target key end

     0   :  { %12 = vsyncpa [#allocation3], 0  ;;  %s664_s24 = smov 0   ;;  %s723_s0 = inlined_call_operand.vmem [shape: f32[2,4,192], index: 0, kind: input, shape index: {}]   ;;  %s724_s1 = inlined_call_operand.hbm [shape: bf16[192,128], index: 1, kind: input, shape index: {}]   ;;  %s725_s2 = inlined_call_operand.vmem [shape: f32[1,128], index: 2, kind: input, shape index: {}]   ;;  %s726_s3 = inlined_call_operand.vmem [shape: f32[1,128], index: 3, kind: input, shape index: {}]   ;;  %s727_s4 = inlined_call_operand.vmem [shape: f32[3,128], index: 4, kind: input, shape index: {}]   ;;  %s728_s5 = inlined_call_operand.vmem [shape: f32[1,128], index: 5, kind: input, shape index: {}]   ;;  %s729_s6 = inlined_call_operand.vmem [shape: f32[4,128], index: 6, kind: input, shape index: {}]   ;;  %s730_s7 = inlined_call_operand.vmem [shape: f32[2,8,128], index: 7, kind: output, shape index: {}]  }
   0x1 LB: > { %s670_s25 = sadd.s32 4294967295, %s618_s24   ;;  %p522_p0 = scmp.ge.s32.totalorder %s618_s24, 1  ;;  %s618_s24 = sphi %s664_s24, %s18_s24  }
   0x2   : > { %p201_p1 = scmp.lt.s32.totalorder %s618_s24, 3  ;;  %s620_s26 = smov [#allocation2]  }
   0x3   : > { %s213_s27 = sshll.u32 %s620_s26, 4  ;;  %p555_p3 = scmp.eq.s32.totalorder %s670_s25, 0  ;;  %s214_s27 = int_to_ptr.vmem [resolvable:$true] %s213_s27 }
   0x4   : > { %p674_p2 = pnand %p522_p0, %p201_p1  ;;  %s593_s29 = scalar_lea.vmem %s214_s27, 1536 }
   0x5   : > { %p594_p7 = scmp.ne.s32.totalorder %s214_s27, %s593_s29  ;;  %p601_p10 = scmp.lt.s32.totalorder %s214_s27, %s214_s27 }
   0x6   : > { %p551_p4 = pneg %p674_p2  ;;  %p602_p11 = scmp.lt.s32.totalorder %s593_s29, %s593_s29 }
   0x8   : > { %p552_p5 = pnand %p555_p3, %p551_p4  ;;  %p603_p12 = por %p602_p11, %p601_p10 }
   0xa   : > { %p584_p6 = pneg %p552_p5 }
   0xc   : > { %p596_p8 = pnand %p594_p7, %p584_p6 }
   0xe   : > { %p597_p9 = pneg %p596_p8 }
  0x10   : > { %p604_p13 = pnand %p603_p12, %p597_p9 }
  0x12   : > { %607 = shalt.err (!%p604_p13)
}
  0x13   : > { %s621_s30 = smov 64   ;;  %s622_s8 = smov 4  }
  0x14   : > { %554 = dma.hbm_to_vmem [thread:$0]  (!%p552_p5), %s724_s1, 1536, %s214_s27, [#allocation3], %s621_s30, %s621_s30, %s622_s8  }
  0x15   : > { %252 = sbr.rel (%p674_p2) target bundleno = 275 (0x113), region = 48 }
  0x1a   : > { %613 = dma.done.wait (%p555_p3), [#allocation3], 1536  }
  0x1b   : > { %615 = vsyncadd (%p555_p3), [#allocation3], 4294965760  ;;  %v623_v0 = vmov 0   ;;  %p283_p0 = scmp.lt.s32.totalorder %s670_s25, 1  ;;  %v569_v1 = vld [vmem:[#allocation2 + $0x38] sm:$0xff]   ;;  %v570_v2 = vld [vmem:[#allocation2 + $0x30] sm:$0xff]  }
  0x1c   : > { %406 = vmatprep.subr.bf16.mxu0 %v623_v0  ;;  %v571_v3 = vld [vmem:[#allocation2 + $0x28] sm:$0xff]   ;;  %v572_v4 = vld [vmem:[#allocation2 + $0x20] sm:$0xff]   ;;  %v573_v11 = vld [vmem:[#allocation2 + $0x18] sm:$0xff]   ;;  %vm402_vm0 = vcmask 523264  }
  0x1d   : > { %407 = vmatpush1.bf16.msra.mxu0 %v569_v1  ;;  %s733_s25 = smov (!%p283_p0, %s670_s25), 1  ;;  %v446_v6 = vld [vmem:[%s726_s3] sm:$0x1]  ;;  %v574_v13 = vld [vmem:[#allocation2 + $0x10] sm:$0xff]   ;;  %v575_v14 = vld [vmem:[#allocation2 + $0x8] sm:$0xff]  }
  0x1e   : > { %408 = vmatprep.subr.bf16.mxu0 %v623_v0  ;;  %s546_s11 = sshll.u32 %s733_s25, 3  ;;  %v447_v7 = vld [vmem:[%s728_s5] sm:$0x1]  ;;  %v577_v16 = vld [vmem:[#allocation2 + $0x58] sm:$0xff]   ;;  %v578_v17 = vld [vmem:[#allocation2 + $0x50] sm:$0xff]  }
  0x1f   : > { %s287_s14 = scalar_lea.vmem %s723_s0, %s546_s11  ;;  %s700_s17 = scalar_lea.vmem %s730_s7, %s546_s11  ;;  %v448_v9 = vadd.f32 %v447_v7, %v446_v6  ;;  %v450_v10 = vld [vmem:[%s727_s4] sm:$0x7]  ;;  %v579_v18 = vld [vmem:[#allocation2 + $0x48] sm:$0xff]  }
  0x20   : > { %v293_v5 = vld [vmem:[%s287_s14] sm:$0xff]  ;;  %451 = vst [vmem:[%s700_s17 + $0x1] sm:$0x7] %v450_v10 }
  0x21   : > { %409 = vmatpush1.bf16.msra.mxu0 %v570_v2  ;;  %v295_v8 = vcombine.high %v293_v5, %v293_v5  ;;  %449 = vst [vmem:[%s700_s17] sm:$0x1] %v448_v9  ;;  %v576_v15 = vld [vmem:[#allocation2] sm:$0xff]   ;;  %v297_v20 = vpack.c.bf16 %v293_v5, %v293_v5 }
  0x22   : > { %410 = vmatprep.subr.bf16.mxu0 %v623_v0  ;;  %v580_v19 = vld [vmem:[#allocation2 + $0x40] sm:$0xff]  }
  0x23   : > { %v298_v12 = vpack.c.bf16 %v295_v8, %v295_v8  ;;  %v530_v21 = vld [vmem:[%s725_s2] ss:$0 sm:$0xff] }
  0x24   : > { %v452_v23 = vld [vmem:[%s729_s6] sm:$0xf] }
  0x25   : > { %411 = vmatpush1.bf16.msra.mxu0 %v571_v3  ;;  %543 = vmatprep.mubr.msk.bf16.mxu0 %vm402_vm0, %v298_v12 }
  0x26   : > { %412 = vmatprep.subr.bf16.mxu0 %v623_v0 }
  0x29   : > { %413 = vmatpush1.bf16.msra.mxu0 %v572_v4 }
  0x2a   : > { %414 = vmatprep.subr.bf16.mxu0 %v623_v0 }
  0x2d   : > { %415 = vmatpush1.bf16.msra.mxu0 %v573_v11 }
  0x2e   : > { %416 = vmatprep.subr.bf16.mxu0 %v623_v0 }
  0x31   : > { %417 = vmatpush1.bf16.msra.mxu0 %v574_v13 }
  0x32   : > { %418 = vmatprep.subr.bf16.mxu0 %v623_v0 }
  0x35   : > { %419 = vmatpush1.bf16.msra.mxu0 %v575_v14 }
  0x36   : > { %420 = vmatprep.subr.bf16.mxu0 %v623_v0 }
  0x39   : > { %421 = vmatpush1.bf16.msra.mxu0 %v576_v15 }
  0x3a   : > { %430 = vmatprep.subr.bf16.mxu0 %v623_v0 }
  0x3d   : > { %431 = vmatpush2.bf16.msra.mxu0 %v577_v16 }
  0x3e   : > { %432 = vmatprep.subr.bf16.mxu0 %v623_v0 }
  0x41   : > { %433 = vmatpush2.bf16.msra.mxu0 %v578_v17 }
  0x42   : > { %434 = vmatprep.subr.bf16.mxu0 %v623_v0 }
  0x45   : > { %435 = vmatpush2.bf16.msra.mxu0 %v579_v18 }
  0x46   : > { %436 = vmatprep.subr.bf16.mxu0 %v623_v0 }
  0x49   : > { %437 = vmatpush2.bf16.msra.mxu0 %v580_v19 }
  0x4c   : > { %439 = vmatmul.mubr.bf16.vlgmr.msra.gmra.mxu0 %v297_v20 }
 0x10c   : > { %v440_v22 = vpop.f32.mrf.mxu0 }
 0x10d   : > { %v441_v24 = vadd.f32 %v530_v21, %v440_v22 }
 0x10e   : > { %v442_v25 = vpop.f32.mrf.mxu0 }
 0x10f   : > { %v453_v26 = vadd.f32 %v452_v23, %v441_v24 }
 0x110   : > { %v443_v27 = vpop.f32.mrf.mxu0 }
 0x111   : > { %454 = vst [vmem:[%s700_s17 + $0x4] sm:$0xf] %v453_v26 }
 0x112   : > { %v444_v28 = vpop.f32.mrf.mxu0 }
 0x113 PF: > { %s18_s24 = sadd.s32 1, %s618_s24  }
 0x114   : > { %p15_p1 = scmp.ge.s32.totalorder %s18_s24, 4  }
 0x116   :  { %17 = sbr.rel (!%p15_p1) target bundleno = 1 (0x1), region = 83 }
 0x11b   :  { %474 = vsyncpa [#allocation3], 1 }
 0x11c   :  { %476 = vsyncpa [#allocation3 + $0x1], 1 }

// kernel: unic_forward.3
= control target key start
LH: loop header
LB: loop body
LE: loop exit
PB: predicated region body
PF: predicated region fallthrough
CT: control target
= control target key end

     0   :  { %s4872_s0 = inlined_call_operand.vmem [shape: f32[2,8,128], index: 0, kind: input, shape index: {}]   ;;  %s4873_s1 = inlined_call_operand.vmem [shape: f32[2,1,128], index: 1, kind: input, shape index: {}]   ;;  %s4874_s2 = inlined_call_operand.hbm [shape: f32[2,1,128], index: 2, kind: input, shape index: {}]   ;;  %s4875_s3 = inlined_call_operand.hbm [shape: bf16[2,128,384], index: 3, kind: input, shape index: {}]   ;;  %s4876_s4 = inlined_call_operand.hbm [shape: f32[2,1,384], index: 4, kind: input, shape index: {}]   ;;  %s4877_s5 = inlined_call_operand.hbm [shape: bf16[2,128,128], index: 5, kind: input, shape index: {}]   ;;  %s4878_s6 = inlined_call_operand.hbm [shape: f32[2,1,128], index: 6, kind: input, shape index: {}]   ;;  %s4879_s7 = inlined_call_operand.hbm [shape: f32[2,1,128], index: 7, kind: input, shape index: {}]   ;;  %s4880_s8 = inlined_call_operand.hbm [shape: f32[2,1,128], index: 8, kind: input, shape index: {}]   ;;  %s4881_s9 = inlined_call_operand.vmem [shape: bf16[2,128,512], index: 9, kind: input, shape index: {}]   ;;  %s4882_s10 = inlined_call_operand.vmem [shape: f32[2,1,512], index: 10, kind: input, shape index: {}]   ;;  %s4883_s11 = inlined_call_operand.vmem [shape: bf16[2,512,128], index: 11, kind: input, shape index: {}]   ;;  %s4884_s12 = inlined_call_operand.hbm [shape: f32[2,1,128], index: 12, kind: input, shape index: {}]   ;;  %s4885_s13 = inlined_call_operand.hbm [shape: bf16[256,128], index: 13, kind: input, shape index: {}]   ;;  %s4886_s14 = inlined_call_operand.hbm [shape: f32[1,128], index: 14, kind: input, shape index: {}]   ;;  %s4887_s15 = inlined_call_operand.hbm [shape: f32[2,128], index: 15, kind: output, shape index: {}]  }
   0x1   :  { %4908 = sst [smem:[#allocation40_spill]] %s4872_s0 }
   0x2   :  { %4909 = sst [smem:[#allocation41_spill]] %s4873_s1 }
   0x3   :  { %4910 = sst [smem:[#allocation42_spill]] %s4874_s2 }
   0x4   :  { %4911 = sst [smem:[#allocation43_spill]] %s4875_s3 }
   0x5   :  { %4912 = sst [smem:[#allocation44_spill]] %s4877_s5 }
   0x6   :  { %4913 = sst [smem:[#allocation45_spill]] %s4881_s9 }
   0x7   :  { %4914 = sst [smem:[#allocation46_spill]] %s4882_s10 }
   0x8   :  { %4915 = sst [smem:[#allocation47_spill]] %s4883_s11 }
   0x9   :  { %4916 = sst [smem:[#allocation48_spill]] %s4885_s13 }
   0xa   :  { %4917 = sst [smem:[#allocation49_spill]] %s4887_s15 }
   0xb   :  { %20 = vsyncpa [#allocation6], 0 }
   0xc   :  { %22 = vsyncpa [#allocation6 + $0x1], 0 }
   0xd   :  { %23 = vsyncpa [#allocation9], 0 }
   0xe   :  { %25 = vsyncpa [#allocation9 + $0x1], 0 }
   0xf   :  { %26 = vsyncpa [#allocation12], 0 }
  0x10   :  { %28 = vsyncpa [#allocation12 + $0x1], 0 }
  0x11   :  { %29 = vsyncpa [#allocation15], 0 }
  0x12   :  { %31 = vsyncpa [#allocation15 + $0x1], 0 }
  0x13   :  { %32 = vsyncpa [#allocation18], 0 }
  0x14   :  { %34 = vsyncpa [#allocation18 + $0x1], 0 }
  0x15   :  { %35 = vsyncpa [#allocation21], 0 }
  0x16   :  { %36 = vsyncpa [#allocation7], 0  ;;  %s4229_s18 = smov 0   ;;  %s4231_s19 = smov 0  }
  0x17   :  { %s4233_s20 = smov 0   ;;  %s4235_s21 = smov 0  }
  0x18   :  { %s4237_s22 = smov 0   ;;  %s4239_s23 = smov 0  }
  0x19 LB: > { %4918 = sst [smem:[#allocation31_spill]] %s4112_s19  ;;  %s4258_s24 = sadd.s32 4294967295, %s4128_s23   ;;  %s4128_s23 = sphi %s4239_s23, %s42_s23   ;;  %s4124_s22 = sphi %s4237_s22, %s4972_s22   ;;  %s4120_s21 = sphi %s4235_s21, %s4971_s21   ;;  %s4116_s20 = sphi %s4233_s20, %s4969_s20   ;;  %s4112_s19 = sphi %s4231_s19, %s4968_s19   ;;  %s4108_s18 = sphi %s4229_s18, %s4967_s18  }
  0x1a   : > { %4919 = sst [smem:[#allocation32_spill]] %s4116_s20  ;;  %p120_p0 = scmp.ne.s32.totalorder %s4116_s20, %s4112_s19 }
  0x1b   : > { %4920 = sst [smem:[#allocation33_spill]] %s4120_s21  ;;  %p121_p1 = scmp.eq.s32.totalorder %s4128_s23, 0 }
  0x1c   : > { %4921 = sst [smem:[#allocation34_spill]] %s4128_s23  ;;  %p126_p2 = scmp.ne.s32.totalorder %s4112_s19, %s4108_s18 }
  0x1d   : > { %4922 = sst [smem:[#allocation35_spill]] %s4258_s24  ;;  %p4888_p3 = scmp.eq.s32.totalorder %s4258_s24, 0 }
  0x1e   : > { %p122_p4 = por %p121_p1, %p120_p0  ;;  %p3077_p5 = scmp.ge.s32.totalorder %s4128_s23, 1 }
  0x1f   : > { %p4269_p6 = por %p4888_p3, %p126_p2  ;;  %p465_p7 = scmp.lt.s32.totalorder %s4128_s23, 3 }
  0x20   : > { %s4130_s28 = smov [#allocation19]   ;;  %p3505_p10 = scmp.lt.s32.totalorder %s4128_s23, 2 }
  0x21   : > { %s4923_s26 = scalar_select %p4269_p6, 1, 0 }
  0x22   : > { %p4274_p8 = pnand %p3077_p5, %p465_p7  ;;  %s486_s29 = sshll.u32 %s4130_s28, 4  ;;  %s487_s29 = int_to_ptr.vmem [resolvable:$true] %s486_s29 }
  0x23   : > { %4924 = sst [smem:[#allocation36_spill]] %s4923_s26  ;;  %s4288_s16 = sand.u32 1, %s4116_s20  }
  0x24   : > { %s4925_s27 = scalar_select %p4274_p8, 1, 0 }
  0x25   : > { %p3471_p9 = pneg %p4274_p8  ;;  %p4290_p12 = pnand %p3505_p10, %p122_p4 }
  0x26   : > { %4926 = sst [smem:[#allocation37_spill]] %s4925_s27  ;;  %s3761_s18 = scalar_lea.vmem %s487_s29, 2048 }
  0x27   : > { %p4283_p11 = pnand %p3471_p9, %p4888_p3  ;;  %p3762_p0 = scmp.ne.s32.totalorder %s487_s29, %s3761_s18 }
  0x28   : > { %p3769_p5 = scmp.lt.s32.totalorder %s487_s29, %s487_s29  ;;  %p3770_p7 = scmp.lt.s32.totalorder %s3761_s18, %s3761_s18 }
  0x29   : > { %p3752_p13 = pneg %p4283_p11 }
  0x2a   : > { %p3771_p9 = por %p3770_p7, %p3769_p5 }
  0x2b   : > { %p3764_p1 = pnand %p3762_p0, %p3752_p13 }
  0x2d   : > { %p3765_p2 = pneg %p3764_p1 }
  0x2f   : > { %p3772_p3 = pnand %p3771_p9, %p3765_p2 }
  0x31   : > { %3775 = shalt.err (!%p3772_p3)
}
  0x32   : > { %s4897_s28 = smov 64   ;;  %s4898_s25 = smov 4  }
  0x33   : > { %s4929_s13 = sld [smem:[#allocation48_spill]]  ;;  %s51_s18 = sadd.s32 1, %s4124_s22 }
  0x34   : > { %p52_p3 = scmp.ge.s32.totalorder %s51_s18, 2  ;;  %s4309_s11 = sand.u32 1, %s4128_s23  }
  0x35   : > { %s3437_s10 = smul.u32 192, %s4288_s16  ;;  %s4931_s3 = sld [smem:[#allocation43_spill]] }
  0x36   : > { %s4974_s18 = smov (%p52_p3, %s51_s18), 0  ;;  %s3438_s9 = smul.u32 3072, %s4124_s22 }
  0x37   : > { %4930 = sst [smem:[#allocation38_spill]] %s4974_s18  ;;  %s110_s1 = ssub.s32 %s4124_s22, %s4974_s18 }
  0x38   : > { %s538_s21 = scalar_lea.vmem [#allocation8], %s3437_s10  ;;  %p111_p4 = scmp.eq.s32.totalorder %s110_s1, 0 }
  0x39   : > { %3474 = dma.hbm_to_vmem [thread:$0]  (!%p4283_p11), %s4929_s13, 2048, %s487_s29, [#allocation18], %s4897_s28, %s4897_s28, %s4898_s25  }
  0x3a   : > { %s545_s24 = sshll.u32 %s538_s21, 4  ;;  %s4932_s15 = sadd.s32 1, %s4116_s20  ;;  %s546_s24 = int_to_ptr.vmem [resolvable:$true] %s545_s24 }
  0x3b   : > { %s544_s0 = scalar_lea.hbm %s4931_s3, %s3438_s9  ;;  %s4903_s28 = scalar_lea.sflag [#allocation9], %s4309_s11 }
  0x3c   : > { %s4323_s29 = scalar_select %p111_p4, %s4116_s20, %s4932_s15  }
  0x3d   : > { %p4328_p10 = pneg %p4290_p12  ;;  %s3789_s13 = scalar_lea.vmem %s546_s24, 3072 }
  0x3e   : > { %4933 = sst [smem:[#allocation39_spill]] %s4323_s29  ;;  %p3790_p0 = scmp.ne.s32.totalorder %s546_s24, %s3789_s13 }
  0x3f   : > { %s4934_s25 = scalar_select %p4328_p10, 1, 0 }
  0x40   : > { %p3792_p1 = pnand %p3790_p0, %p4328_p10  ;;  %s4133_s1 = smov [#allocation8]  }
  0x41   : > { %s3794_s10 = sshll.u32 %s4133_s1, 4  ;;  %s3795_s10 = int_to_ptr.vmem [resolvable:$false] %s3794_s10 }
  0x42   : > { %p3793_p2 = pneg %p3792_p1  ;;  %s3796_s9 = scalar_lea.vmem %s3795_s10, 6144 }
  0x43   : > { %p3797_p5 = scmp.lt.s32.totalorder %s546_s24, %s3795_s10  ;;  %p3798_p7 = scmp.lt.s32.totalorder %s3796_s9, %s3789_s13 }
  0x45   : > { %p3799_p9 = por %p3798_p7, %p3797_p5 }
  0x47   : > { %p3800_p3 = pnand %p3799_p9, %p3793_p2 }
  0x49   : > { %3803 = shalt.err (!%p3800_p3)
}
  0x4a   : > { %s4134_s19 = smov 192   ;;  %s4135_s21 = smov 12  }
  0x4b   : > { %3484 = dma.hbm_to_vmem [thread:$0]  (!%p4290_p12), %s544_s0, 3072, %s546_s24, %s4903_s28, %s4134_s19, %s4134_s19, %s4135_s21  }
  0x4c   : > { %s3085_s26 = sshll.u32 %s4288_s16, 6  ;;  %s3240_s15 = sshll.u32 %s4124_s22, 10 }
  0x4d   : > { %s4935_s5 = sld [smem:[#allocation44_spill]]  ;;  %s578_s9 = scalar_lea.vmem [#allocation11], %s3085_s26 }
  0x4e   : > { %s585_s3 = sshll.u32 %s578_s9, 4  ;;  %s4344_s18 = sshll.u32 %s4124_s22, 4  ;;  %s586_s3 = int_to_ptr.vmem [resolvable:$true] %s585_s3 }
  0x4f   : > { %s575_s29 = scalar_lea.sflag [#allocation12], %s4309_s11  ;;  %s3817_s20 = scalar_lea.vmem %s586_s3, 1024 }
  0x50   : > { %p3818_p4 = scmp.ne.s32.totalorder %s586_s3, %s3817_s20  ;;  %s4136_s23 = smov [#allocation11]  }
  0x51   : > { %s3822_s27 = sshll.u32 %s4136_s23, 4  ;;  %s3823_s27 = int_to_ptr.vmem [resolvable:$false] %s3822_s27 }
  0x52   : > { %p3820_p0 = pnand %p3818_p4, %p4328_p10  ;;  %s3824_s24 = scalar_lea.vmem %s3823_s27, 2048 }
  0x53   : > { %s584_s13 = scalar_lea.hbm %s4935_s5, %s3240_s15  ;;  %p3825_p2 = scmp.lt.s32.totalorder %s586_s3, %s3823_s27 }
  0x54   : > { %p3821_p1 = pneg %p3820_p0  ;;  %p3826_p5 = scmp.lt.s32.totalorder %s3824_s24, %s3817_s20 }
  0x56   : > { %p3827_p7 = por %p3826_p5, %p3825_p2 }
  0x58   : > { %p3828_p9 = pnand %p3827_p7, %p3821_p1 }
  0x5a   : > { %3831 = shalt.err (!%p3828_p9)
}
  0x5b   : > { %s4936_s0 = smov 4   ;;  %s4937_s19 = smov 64  }
  0x5c   : > { %3490 = dma.hbm_to_vmem [thread:$0]  (!%p4290_p12), %s584_s13, 1024, %s586_s3, %s575_s29, %s4937_s19, %s4937_s19, %s4936_s0  }
  0x5d   : > { %s620_s27 = scalar_lea.hbm %s4879_s7, %s4344_s18  ;;  %s615_s20 = scalar_lea.vmem [#allocation14], %s4288_s16 }
  0x5e   : > { %s622_s26 = sshll.u32 %s615_s20, 4  ;;  %s4137_s15 = smov [#allocation20]   ;;  %s623_s26 = int_to_ptr.vmem [resolvable:$true] %s622_s26 }
  0x5f   : > { %s500_s1 = sshll.u32 %s4137_s15, 4  ;;  %s613_s10 = scalar_lea.sflag [#allocation15], %s4309_s11  ;;  %s501_s1 = int_to_ptr.vmem [resolvable:$true] %s500_s1 }
  0x60   : > { %s3845_s9 = scalar_lea.vmem %s623_s26, 16  ;;  %s4138_s24 = smov [#allocation14]  }
  0x61   : > { %p3846_p3 = scmp.ne.s32.totalorder %s623_s26, %s3845_s9  ;;  %s3850_s28 = sshll.u32 %s4138_s24, 4  ;;  %s3851_s28 = int_to_ptr.vmem [resolvable:$false] %s3850_s28 }
  0x62   : > { %s3852_s5 = scalar_lea.vmem %s3851_s28, 32  ;;  %p3853_p1 = scmp.lt.s32.totalorder %s623_s26, %s3851_s28 }
  0x63   : > { %p3848_p4 = pnand %p3846_p3, %p4328_p10  ;;  %p3854_p2 = scmp.lt.s32.totalorder %s3852_s5, %s3845_s9 }
  0x65   : > { %p3849_p0 = pneg %p3848_p4  ;;  %p3855_p5 = por %p3854_p2, %p3853_p1 }
  0x67   : > { %p3856_p7 = pnand %p3855_p5, %p3849_p0 }
  0x69   : > { %3859 = shalt.err (!%p3856_p7)
}
  0x6a   : > { %3496 = dma.hbm_to_vmem [thread:$0]  (!%p4290_p12), %s620_s27, 16, %s623_s26, %s613_s10  }
  0x6b   : > { %s3871_s3 = scalar_lea.vmem %s501_s1, 16  ;;  %s3878_s13 = scalar_lea.vmem %s501_s1, 32 }
  0x6c   : > { %p3872_p9 = scmp.ne.s32.totalorder %s501_s1, %s3871_s3  ;;  %p3879_p6 = scmp.lt.s32.totalorder %s501_s1, %s501_s1 }
  0x6d   : > { %p3880_p8 = scmp.lt.s32.totalorder %s3878_s13, %s3871_s3 }
  0x6e   : > { %p3874_p3 = pnand %p3872_p9, %p3752_p13 }
  0x6f   : > { %p3881_p10 = por %p3880_p8, %p3879_p6 }
  0x70   : > { %p3875_p4 = pneg %p3874_p3 }
  0x72   : > { %p3882_p1 = pnand %p3881_p10, %p3875_p4 }
  0x74   : > { %3885 = shalt.err (!%p3882_p1)
}
  0x75   : > { %3477 = dma.hbm_to_vmem [thread:$0]  (!%p4283_p11), %s4886_s14, 16, %s501_s1, [#allocation21]  }
  0x76   : > { %s4938_s2 = sld [smem:[#allocation42_spill]]  ;;  %s520_s21 = scalar_lea.vmem [#allocation5], %s4288_s16 }
  0x77   : > { %s527_s27 = sshll.u32 %s520_s21, 4  ;;  %s3439_s20 = smul.u32 3, %s4288_s16  ;;  %s528_s27 = int_to_ptr.vmem [resolvable:$true] %s527_s27 }
  0x78   : > { %s3440_s26 = smul.u32 48, %s4124_s22  ;;  %s518_s30 = scalar_lea.sflag [#allocation6], %s4288_s16 }
  0x79   : > { %s3899_s15 = scalar_lea.vmem %s528_s27, 16  ;;  %p4939_p8 = scmp.ne.s32.totalorder %s4934_s25, 0 }
  0x7a   : > { %p3900_p6 = scmp.ne.s32.totalorder %s528_s27, %s3899_s15  ;;  %s4139_s9 = smov [#allocation5]  }
  0x7b   : > { %s3904_s24 = sshll.u32 %s4139_s9, 4  ;;  %s3905_s24 = int_to_ptr.vmem [resolvable:$false] %s3904_s24 }
  0x7c   : > { %s525_s23 = scalar_lea.hbm %s4938_s2, %s4344_s18  ;;  %p3902_p13 = pnand %p3900_p6, %p4939_p8 }
  0x7d   : > { %s3906_s3 = scalar_lea.vmem %s3905_s24, 32  ;;  %p3907_p11 = scmp.lt.s32.totalorder %s528_s27, %s3905_s24 }
  0x7e   : > { %p3903_p10 = pneg %p3902_p13  ;;  %p3908_p0 = scmp.lt.s32.totalorder %s3906_s3, %s3899_s15 }
  0x80   : > { %p3909_p2 = por %p3908_p0, %p3907_p11 }
  0x82   : > { %p3910_p5 = pnand %p3909_p2, %p3903_p10 }
  0x84   : > { %3913 = shalt.err (!%p3910_p5)
}
  0x85   : > { %3481 = dma.hbm_to_vmem [thread:$0]  (!%p4290_p12), %s525_s23, 16, %s528_s27, %s518_s30  }
  0x86   : > { %s565_s5 = scalar_lea.hbm %s4876_s4, %s3440_s26  ;;  %s559_s28 = scalar_lea.vmem [#allocation10], %s3439_s20 }
  0x87   : > { %s567_s0 = sshll.u32 %s559_s28, 4  ;;  %s603_s9 = scalar_lea.hbm %s4878_s6, %s4344_s18  ;;  %s568_s0 = int_to_ptr.vmem [resolvable:$true] %s567_s0 }
  0x88   : > { %s3927_s15 = scalar_lea.vmem %s568_s0, 48  ;;  %s4140_s24 = smov [#allocation10]  }
  0x89   : > { %p3928_p7 = scmp.ne.s32.totalorder %s568_s0, %s3927_s15  ;;  %s3932_s3 = sshll.u32 %s4140_s24, 4  ;;  %s3933_s3 = int_to_ptr.vmem [resolvable:$false] %s3932_s3 }
  0x8a   : > { %s3934_s23 = scalar_lea.vmem %s3933_s3, 96  ;;  %p3935_p4 = scmp.lt.s32.totalorder %s568_s0, %s3933_s3 }
  0x8b   : > { %p3930_p9 = pnand %p3928_p7, %p4939_p8  ;;  %p3936_p1 = scmp.lt.s32.totalorder %s3934_s23, %s3927_s15 }
  0x8d   : > { %p3931_p3 = pneg %p3930_p9  ;;  %p3937_p6 = por %p3936_p1, %p3935_p4 }
  0x8f   : > { %p3938_p13 = pnand %p3937_p6, %p3931_p3 }
  0x91   : > { %3941 = shalt.err (!%p3938_p13)
}
  0x92   : > { %s4940_s27 = scalar_lea.sflag [#allocation9], %s4309_s11  ;;  %s598_s20 = scalar_lea.vmem [#allocation13], %s4288_s16 }
  0x93   : > { %3487 = dma.hbm_to_vmem [thread:$0]  (!%p4290_p12), %s565_s5, 48, %s568_s0, %s4940_s27  }
  0x94   : > { %s605_s26 = sshll.u32 %s598_s20, 4  ;;  %s637_s13 = scalar_lea.hbm %s4880_s8, %s4344_s18  ;;  %s606_s26 = int_to_ptr.vmem [resolvable:$true] %s605_s26 }
  0x95   : > { %s3955_s28 = scalar_lea.vmem %s606_s26, 16  ;;  %s4141_s19 = smov [#allocation13]  }
  0x96   : > { %p3956_p10 = scmp.ne.s32.totalorder %s606_s26, %s3955_s28  ;;  %s3960_s21 = sshll.u32 %s4141_s19, 4  ;;  %s3961_s21 = int_to_ptr.vmem [resolvable:$false] %s3960_s21 }
  0x97   : > { %s3962_s15 = scalar_lea.vmem %s3961_s21, 32  ;;  %p3963_p2 = scmp.lt.s32.totalorder %s606_s26, %s3961_s21 }
  0x98   : > { %p3958_p11 = pnand %p3956_p10, %p4939_p8  ;;  %p3964_p5 = scmp.lt.s32.totalorder %s3962_s15, %s3955_s28 }
  0x9a   : > { %p3959_p0 = pneg %p3958_p11  ;;  %p3965_p7 = por %p3964_p5, %p3963_p2 }
  0x9c   : > { %p3966_p9 = pnand %p3965_p7, %p3959_p0 }
  0x9e   : > { %3969 = shalt.err (!%p3966_p9)
}
  0x9f   : > { %3493 = dma.hbm_to_vmem [thread:$0]  (!%p4290_p12), %s603_s9, 16, %s606_s26, %s575_s29  }
  0xa0   : > { %s632_s24 = scalar_lea.vmem [#allocation16], %s4288_s16  ;;  %s4142_s27 = smov [#allocation16]  }
  0xa1   : > { %s639_s3 = sshll.u32 %s632_s24, 4  ;;  %s3988_s20 = sshll.u32 %s4142_s27, 4  ;;  %s640_s3 = int_to_ptr.vmem [resolvable:$true] %s639_s3  ;;  %s3989_s20 = int_to_ptr.vmem [resolvable:$false] %s3988_s20 }
  0xa2   : > { %s3983_s23 = scalar_lea.vmem %s640_s3, 16  ;;  %s3990_s30 = scalar_lea.vmem %s3989_s20, 32 }
  0xa3   : > { %p3984_p3 = scmp.ne.s32.totalorder %s640_s3, %s3983_s23  ;;  %p3991_p6 = scmp.lt.s32.totalorder %s640_s3, %s3989_s20 }
  0xa4   : > { %p3992_p13 = scmp.lt.s32.totalorder %s3990_s30, %s3983_s23 }
  0xa5   : > { %p3986_p4 = pnand %p3984_p3, %p4939_p8 }
  0xa6   : > { %p3993_p10 = por %p3992_p13, %p3991_p6 }
  0xa7   : > { %p3987_p1 = pneg %p3986_p4 }
  0xa9   : > { %p3994_p11 = pnand %p3993_p10, %p3987_p1 }
  0xab   : > { %3997 = shalt.err (!%p3994_p11)
}
  0xac   : > { %3499 = dma.hbm_to_vmem [thread:$0]  (!%p4290_p12), %s637_s13, 16, %s640_s3, %s613_s10  }
  0xad   : > { %s677_s28 = scalar_lea.hbm %s4884_s12, %s4344_s18  ;;  %s672_s19 = scalar_lea.vmem [#allocation17], %s4288_s16 }
  0xae   : > { %s679_s21 = sshll.u32 %s672_s19, 4  ;;  %s670_s15 = scalar_lea.sflag [#allocation18], %s4309_s11  ;;  %s680_s21 = int_to_ptr.vmem [resolvable:$true] %s679_s21 }
  0xaf   : > { %s4011_s5 = scalar_lea.vmem %s680_s21, 16  ;;  %s4143_s0 = smov [#allocation17]  }
  0xb0   : > { %p4012_p0 = scmp.ne.s32.totalorder %s680_s21, %s4011_s5  ;;  %s4016_s24 = sshll.u32 %s4143_s0, 4  ;;  %s4017_s24 = int_to_ptr.vmem [resolvable:$false] %s4016_s24 }
  0xb1   : > { %s4018_s23 = scalar_lea.vmem %s4017_s24, 32  ;;  %p4019_p7 = scmp.lt.s32.totalorder %s680_s21, %s4017_s24 }
  0xb2   : > { %p4014_p2 = pnand %p4012_p0, %p4939_p8  ;;  %p4020_p9 = scmp.lt.s32.totalorder %s4018_s23, %s4011_s5 }
  0xb4   : > { %p4015_p5 = pneg %p4014_p2  ;;  %p4021_p3 = por %p4020_p9, %p4019_p7 }
  0xb6   : > { %p4022_p4 = pnand %p4021_p3, %p4015_p5 }
  0xb8   : > { %4025 = shalt.err (!%p4022_p4)
}
  0xb9   : > { %3502 = dma.hbm_to_vmem [thread:$0]  (!%p4290_p12), %s677_s28, 16, %s680_s21, %s670_s15  }
  0xba   : > { %s4941_s16 = sld [smem:[#allocation37_spill]] }
  0xc0   : > { %p4942_p1 = scmp.ne.s32.totalorder %s4941_s16, 0 }
  0xc1   : > { %s4943_s11 = sld [smem:[#allocation31_spill]] (!%p4942_p1) }
  0xc2   : > { %688 = sbr.rel (%p4942_p1) target bundleno = 2968 (0xb98), region = 80  ;;  %s4944_s18 = sld [smem:[#allocation36_spill]] (!%p4942_p1) }
  0xc7   : > { %s4442_s25 = sand.u32 1, %s4943_s11  }
  0xc8   : > { %s691_s10 = scalar_lea.sflag [#allocation6], %s4442_s25  ;;  %p4945_p8 = scmp.ne.s32.totalorder %s4944_s18, 0 }
  0xca   : > { %4075 = dma.done.wait (%p4945_p8), %s691_s10, 16  }
  0xcb   : > { %4077 = vsyncadd (%p4945_p8), %s691_s10, 4294967280  ;;  %s4946_s3 = sld [smem:[#allocation35_spill]]  ;;  %s3441_s27 = smul.u32 192, %s4442_s25 }
  0xcd   : > { %s4452_s30 = scalar_lea.vmem [#allocation8], %s3441_s27 }
  0xd1   : > { %s698_s17 = sand.u32 1, %s4946_s3  }
  0xd2   : > { %s699_s20 = scalar_lea.sflag [#allocation9], %s698_s17 }
  0xd3   : > { %4079 = dma.done.wait (%p4945_p8), %s699_s20, 3120  }
  0xd4   : > { %4081 = vsyncadd (%p4945_p8), %s699_s20, 4294964176  ;;  %s3442_s29 = smul.u32 3, %s4442_s25  ;;  %s3093_s9 = sshll.u32 %s4442_s25, 6 }
  0xd5   : > { %s717_s1 = scalar_lea.sflag [#allocation12], %s698_s17  ;;  %s4462_s28 = scalar_lea.vmem [#allocation11], %s3093_s9 }
  0xd6   : > { %s4460_s26 = scalar_lea.vmem [#allocation10], %s3442_s29 }
  0xd7   : > { %4083 = dma.done.wait (%p4945_p8), %s717_s1, 1040  }
  0xd8   : > { %4085 = vsyncadd (%p4945_p8), %s717_s1, 4294966256  ;;  %s734_s21 = scalar_lea.sflag [#allocation15], %s698_s17 }
  0xd9   : > { %4087 = dma.done.wait (%p4945_p8), %s734_s21, 32  }
  0xda   : > { %4089 = vsyncadd (%p4945_p8), %s734_s21, 4294967264  ;;  %s750_s0 = scalar_lea.sflag [#allocation18], %s698_s17 }
  0xdb   : > { %4091 = dma.done.wait (%p4945_p8), %s750_s0, 16  }
  0xdc   : > { %4093 = vsyncadd (%p4945_p8), %s750_s0, 4294967280  ;;  %p4947_p12 = scmp.eq.s32.totalorder %s4946_s3, 0 }
  0xde   : > { %4095 = dma.done.wait (%p4947_p12), [#allocation18], 2048   ;;  %p4948_p6 = pmov %p4947_p12 }
  0xe0   : > { %4097 = vsyncadd (%p4948_p6), [#allocation18], 4294965248  ;;  %p4949_p13 = pmov %p4948_p6 }
  0xe1   : > { %p4950_p10 = pmov %p4948_p6 }
  0xe2   : > { %4099 = dma.done.wait (%p4949_p13), [#allocation21], 16  }
  0xe3   : > { %4101 = vsyncadd (%p4950_p10), [#allocation21], 4294967280  ;;  %s4951_s23 = sld [smem:[#allocation33_spill]] }
  0xe4   : > { %s4952_s10 = sld [smem:[#allocation41_spill]] }
  0xe5   : > { %s4953_s9 = sld [smem:[#allocation45_spill]] }
  0xe6   : > { %s4954_s24 = sld [smem:[#allocation46_spill]] }
  0xe7   : > { %s4955_s13 = sld [smem:[#allocation47_spill]] }
  0xe9   : > { %p860_p11 = scmp.lt.s32.totalorder %s4951_s23, 1  ;;  %p3101_p0 = scmp.ne.s32.totalorder %s4951_s23, 0 }
  0xeb   : > { %s4490_s16 = scalar_select %p860_p11, %s4951_s23, 1 }
  0xec   : > { %881 = sbr.rel (%p3101_p0) target bundleno = 266 (0x10a), region = 124 }
  0xed   : > { %s862_s17 = scalar_lea.vmem %s4952_s10, %s4490_s16  ;;  %s3241_s27 = sshll.u32 %s4490_s16, 8 }
  0xee   : > { %s4500_s1 = scalar_lea.vmem %s4953_s9, %s3241_s27  ;;  %s3098_s3 = sshll.u32 %s4490_s16, 2 }
  0xef   : > { %s4506_s5 = scalar_lea.vmem %s4954_s24, %s3098_s3  ;;  %s4511_s2 = scalar_lea.vmem %s4955_s13, %s3241_s27 }
  0xf0   : > { %s4956_s10 = sld [smem:[#allocation40_spill]] (!%p3101_p0) }
  0xf1   : > { %vm897_vm0 = vcmask 1043456   ;;  %vm889_vm1 = vcmask 1041409  }
  0xf6   : > { %v882_v0 = vld [vmem:[%s4956_s10] sm:$0xff]  ;;  %v883_v1 = vld [vmem:[%s4956_s10 + $0x8] sm:$0xff] }
  0xf7   : > { %884 = vst [vmem:[#allocation2] sm:$0xff] %v882_v0  ;;  %v893_v2 = vrot.slane %v882_v0, 4  ;;  %885 = vst [vmem:[#allocation2 + $0x8] sm:$0xff] %v883_v1  ;;  %v888_v3 = vrot.slane %v883_v1, 7  ;;  %v894_v4 = vrot.slane %v883_v1, 4 }
  0xf9   : > { %v898_v5 = vsel %vm897_vm0, %v893_v2, 0.0  ;;  %v905_v6 = vsel %vm897_vm0, %v894_v4, 0.0  ;;  %v890_v7 = vsel %vm889_vm1, %v888_v3, %v882_v0 }
  0xfa   : > { %v899_v8 = vrot.slane %v898_v5, 4  ;;  %v906_v9 = vrot.slane %v905_v6, 4  ;;  %892 = vst [vmem:[#allocation3] sm:$0x3] %v890_v7 }
  0xfc   : > { %v900_v10 = vadd.f32 %v899_v8, %v898_v5  ;;  %v907_v11 = vadd.f32 %v906_v9, %v905_v6 }
  0xfe   : > { %v901_v12 = vrot.slane %v900_v10, 2  ;;  %v908_v13 = vrot.slane %v907_v11, 2 }
 0x100   : > { %v902_v14 = vadd.f32 %v901_v12, %v900_v10  ;;  %v909_v15 = vadd.f32 %v908_v13, %v907_v11 }
 0x102   : > { %v903_v16 = vrot.slane %v902_v14, 1  ;;  %v910_v17 = vrot.slane %v909_v15, 1 }
 0x104   : > { %v904_v18 = vadd.f32 %v903_v16, %v902_v14  ;;  %v911_v19 = vadd.f32 %v910_v17, %v909_v15 }
 0x106   : > { %v913_v20 = vmul.f32 0.25, %v904_v18  ;;  %v914_v21 = vmul.f32 0.25, %v911_v19 }
 0x108   : > { %v917_v22 = vsel %vm889_vm1, %v914_v21, %v913_v20 }
 0x109   : > { %919 = vst [vmem:[#allocation4] sm:$0x3] %v917_v22 }
 0x10a PF: > { %v4522_v23 = vld [vmem:[#allocation2] sm:$0xff]  ;;  %v4524_v24 = vld [vmem:[#allocation2 + $0x8] sm:$0xff]  ;;  %v4144_v27 = vmov 0.0   ;;  %v4145_v50 = vmov 0   ;;  %vm4146_vm2 = vmmov 0   ;;  %s4958_s15 = scalar_lea.vmem [#allocation5], %s4442_s25  ;;  %v998_v12 = vlaneseq }
 0x10b   : > { %924 = vadd.xlane.f32.xlu0 %v4522_v23  ;;  %v3574_v25 = vld [vmem:[%s4452_s30 + $0xac] ss:$12 sps:$4 sm:$0xff]   ;;  %v3576_v26 = vld [vmem:[%s4452_s30 + $0xa8] ss:$12 sps:$4 sm:$0xff]   ;;  %3349 = vmatprep.subr.bf16.mxu1 %v4144_v27  ;;  %v3577_v28 = vld [vmem:[%s4452_s30 + $0xb0] ss:$12 sps:$4 sm:$0xff]  }
 0x10c   : > { %1141 = vmatprep.subr.bf16.mxu0 %v3574_v25  ;;  %3350 = vmatpush3.bf16.msra.mxu1 %v3577_v28  ;;  %v3578_v37 = vld [vmem:[%s4452_s30 + $0x94] ss:$12 sps:$4 sm:$0xff]   ;;  %v3580_v38 = vld [vmem:[%s4452_s30 + $0x90] ss:$12 sps:$4 sm:$0xff]   ;;  %v3581_v39 = vld [vmem:[%s4452_s30 + $0x98] ss:$12 sps:$4 sm:$0xff]  }
 0x10d   : > { %1142 = vmatpush1.bf16.msra.mxu0 %v3576_v26  ;;  %3351 = vmatprep.subr.bf16.mxu1 %v4144_v27  ;;  %v3582_v40 = vld [vmem:[%s4452_s30 + $0x7c] ss:$12 sps:$4 sm:$0xff]   ;;  %v3584_v41 = vld [vmem:[%s4452_s30 + $0x78] ss:$12 sps:$4 sm:$0xff]   ;;  %v3585_v42 = vld [vmem:[%s4452_s30 + $0x80] ss:$12 sps:$4 sm:$0xff]  }
 0x10e   : > { %1143 = vmatprep.subr.bf16.mxu0 %v3578_v37  ;;  %v3586_v43 = vld [vmem:[%s4452_s30 + $0x64] ss:$12 sps:$4 sm:$0xff]   ;;  %v3588_v44 = vld [vmem:[%s4452_s30 + $0x60] ss:$12 sps:$4 sm:$0xff]   ;;  %v3589_v45 = vld [vmem:[%s4452_s30 + $0x68] ss:$12 sps:$4 sm:$0xff]   ;;  %1173 = vmatprep.mubr.bf16.mxu0 %v4145_v50 }
 0x10f   : > { %926 = vadd.xlane.f32.xlu0 %v4524_v24  ;;  %v3590_v46 = vld [vmem:[%s4452_s30 + $0x4c] ss:$12 sps:$4 sm:$0xff]   ;;  %v3592_v47 = vld [vmem:[%s4452_s30 + $0x48] ss:$12 sps:$4 sm:$0xff]   ;;  %v3593_v48 = vld [vmem:[%s4452_s30 + $0x50] ss:$12 sps:$4 sm:$0xff]   ;;  %3365 = vmatprep.mubr.msk.bf16.mxu1 %vm4146_vm2, %v4144_v27 }
 0x110   : > { %3352 = vmatpush3.bf16.msra.mxu1 %v3581_v39  ;;  %v3594_v49 = vld [vmem:[%s4452_s30 + $0x34] ss:$12 sps:$4 sm:$0xff]   ;;  %v3596_v51 = vld [vmem:[%s4452_s30 + $0x30] ss:$12 sps:$4 sm:$0xff]   ;;  %v3597_v52 = vld [vmem:[%s4452_s30 + $0x38] ss:$12 sps:$4 sm:$0xff]  }
 0x111   : > { %1144 = vmatpush1.bf16.msra.mxu0 %v3580_v38  ;;  %3353 = vmatprep.subr.bf16.mxu1 %v4144_v27  ;;  %v3598_v53 = vld [vmem:[%s4452_s30 + $0x1c] ss:$12 sps:$4 sm:$0xff]   ;;  %v3600_v54 = vld [vmem:[%s4452_s30 + $0x18] ss:$12 sps:$4 sm:$0xff]   ;;  %v3601_v55 = vld [vmem:[%s4452_s30 + $0x20] ss:$12 sps:$4 sm:$0xff]  }
 0x112   : > { %1145 = vmatprep.subr.bf16.mxu0 %v3582_v40  ;;  %v3602_v56 = vld [vmem:[%s4452_s30 + $0x4] ss:$12 sps:$4 sm:$0xff]   ;;  %v3604_v57 = vld [vmem:[%s4452_s30] ss:$12 sps:$4 sm:$0xff]   ;;  %v3605_v58 = vld [vmem:[%s4452_s30 + $0x8] ss:$12 sps:$4 sm:$0xff]  }
 0x113   : > { %v3102_v3 = vld [vmem:[%s862_s17] ss:$0 sm:$0xff]  ;;  %v4588_v13 = vshrl.u32 %v998_v12, 7  ;;  %v996_v16 = vld [vmem:[%s4460_s26] sm:$0x7]  ;;  %vm1492_vm3 = vcmask 1043456  }
 0x114   : > { %3354 = vmatpush3.bf16.msra.mxu1 %v3585_v42  ;;  %v3103_v7 = vld [vmem:[%s4958_s15] ss:$0 sm:$0xff]  ;;  %vm1255_vm4 = vcmask 523264   ;;  %s4147_s26 = smov 64   ;;  %vm1440_vm5 = vcmask 64512   ;;  %s4960_s24 = scalar_lea.vmem [#allocation14], %s4442_s25 }
 0x115   : > { %1146 = vmatpush1.bf16.msra.mxu0 %v3584_v41  ;;  %3355 = vmatprep.subr.bf16.mxu1 %v4144_v27  ;;  %v1000_v14 = vsub.s32 0, %v4588_v13  ;;  %v1008_v15 = vsub.s32 2, %v4588_v13  ;;  %v1004_v17 = vsub.s32 1, %v4588_v13  ;;  %s4961_s23 = scalar_lea.vmem [#allocation16], %s4442_s25  ;;  %vm2571_vm6 = vcmask 1041409  }
 0x116   : > { %1147 = vmatprep.subr.bf16.mxu0 %v3586_v43 }
 0x117   : > { %v1001_v18 = vrot.slane %v996_v16, %v1000_v14  ;;  %v1009_v19 = vrot.slane %v996_v16, %v1008_v15  ;;  %v1005_v20 = vrot.slane %v996_v16, %v1004_v17 }
 0x118   : > { %3356 = vmatpush3.bf16.msra.mxu1 %v3589_v45 }
 0x119   : > { %1148 = vmatpush1.bf16.msra.mxu0 %v3588_v44  ;;  %3357 = vmatprep.subr.bf16.mxu1 %v4144_v27 }
 0x11a   : > { %1149 = vmatprep.subr.bf16.mxu0 %v3590_v46 }
 0x11c   : > { %3358 = vmatpush3.bf16.msra.mxu1 %v3593_v48 }
 0x11d   : > { %1150 = vmatpush1.bf16.msra.mxu0 %v3592_v47  ;;  %3359 = vmatprep.subr.bf16.mxu1 %v4144_v27 }
 0x11e   : > { %1151 = vmatprep.subr.bf16.mxu0 %v3594_v49 }
 0x120   : > { %3360 = vmatpush3.bf16.msra.mxu1 %v3597_v52 }
 0x121   : > { %1152 = vmatpush1.bf16.msra.mxu0 %v3596_v51  ;;  %3361 = vmatprep.subr.bf16.mxu1 %v4144_v27 }
 0x122   : > { %1153 = vmatprep.subr.bf16.mxu0 %v3598_v53 }
 0x124   : > { %3362 = vmatpush3.bf16.msra.mxu1 %v3601_v55 }
 0x125   : > { %1154 = vmatpush1.bf16.msra.mxu0 %v3600_v54  ;;  %3363 = vmatprep.subr.bf16.mxu1 %v4144_v27 }
 0x126   : > { %1155 = vmatprep.subr.bf16.mxu0 %v3602_v56 }
 0x128   : > { %3364 = vmatpush3.bf16.msra.mxu1 %v3605_v58 }
 0x129   : > { %1156 = vmatpush1.bf16.msra.mxu0 %v3604_v57  ;;  %3369 = vmatprep.subr.bf16.mxu1 %v4144_v27 }
 0x12a   : > { %3393 = vmatprep.subr.bf16.mxu0 %v4144_v27 }
 0x194   : > { %v925_v29 = vpop.xlane.xlu0 %924 }
 0x195   : > { %v929_v30 = vmul.f32 0.0078125, %v925_v29 }
 0x197   : > { %v4534_v31 = vsub.f32 %v4522_v23, %v929_v30 }
 0x198   : > { %v927_v32 = vpop.xlane.xlu0 %926 }
 0x199   : > { %v930_v33 = vmul.f32 0.0078125, %v927_v32  ;;  %v933_v34 = vmul.f32 %v4534_v31, %v4534_v31 }
 0x19b   : > { %v4539_v35 = vsub.f32 %v4524_v24, %v930_v33  ;;  %935 = vadd.xlane.f32.xlu1 %v933_v34 }
 0x19d   : > { %v934_v36 = vmul.f32 %v4539_v35, %v4539_v35 }
 0x19f   : > { %937 = vadd.xlane.f32.xlu1 %v934_v36 }
 0x224   : > { %v936_v59 = vpop.xlane.xlu1 %935 }
 0x225   : > { %v939_v60 = vmul.f32 0.0078125, %v936_v59 }
 0x227   : > { %v941_v61 = vadd.f32 1e-06, %v939_v60 }
 0x228   : > { %v938_v62 = vpop.xlane.xlu1 %937 }
 0x229   : > { %3694 = vrsqrt.f32 %v941_v61  ;;  %v940_v63 = vmul.f32 0.0078125, %v938_v62 }
 0x22b   : > { %v942_v0 = vadd.f32 1e-06, %v940_v63 }
 0x22d   : > { %3696 = vrsqrt.f32 %v942_v0 }
 0x236   : > { %v3695_v1 = vpop.eup %3694 }
 0x237   : > { %v945_v2 = vmul.f32 %v3695_v1, %v4534_v31 }
 0x239   : > { %v953_v6 = vmul.f32 %v3102_v3, %v945_v2 }
 0x23a   : > { %v3697_v4 = vpop.eup %3696 }
 0x23b   : > { %v946_v5 = vmul.f32 %v3697_v4, %v4539_v35  ;;  %v961_v9 = vadd.f32 %v3103_v7, %v953_v6 }
 0x23d   : > { %v954_v8 = vmul.f32 %v3102_v3, %v946_v5 }
 0x23f   : > { %v962_v10 = vadd.f32 %v3103_v7, %v954_v8 }
 0x241   : > { %v963_v11 = vpack.c.bf16 %v962_v10, %v961_v9 }
 0x243   : > { %1174 = vmatmul.mubr.bf16.vlgmr.msra.gmra.mxu0 %v963_v11  ;;  %3366 = vmatmul.mubr.bf16.vlgmr.msra.gmra.mxu1 %v963_v11 }
 0x244   : > { %3371 = vmatprep.mubr.msk.bf16.mxu1 %vm4146_vm2, %v4144_v27  ;;  %3395 = vmatprep.mubr.msk.bf16.mxu0 %vm4146_vm2, %v4144_v27 }
 0x303   : > { %v1175_v21 = vpop.f32.mrf.mxu0  ;;  %v1218_v22 = vpop.f32.mrf.mxu1 }
 0x304   : > { %v1176_v25 = vadd.f32 %v1175_v21, %v1001_v18  ;;  %v1219_v26 = vadd.f32 %v1218_v22, %v1009_v19 }
 0x305   : > { %v1177_v28 = vpop.f32.mrf.mxu0  ;;  %v3367_v29 = vpop.f32.mrf.mxu1 }
 0x306   : > { %v3243_v30 = vpack.c.bf16 %v1176_v25, %v1176_v25  ;;  %v4600_v31 = vpack.c.bf16 %v1219_v26, %v1219_v26  ;;  %v1178_v32 = vadd.f32 %v1177_v28, %v1005_v20 }
 0x307   : > { %v1179_v33 = vpop.f32.mrf.mxu0  ;;  %v1221_v34 = vpop.f32.mrf.mxu1 }
 0x308   : > { %v1494_v35 = vsel %vm1492_vm3, %v4600_v31, 0  ;;  %v3245_v36 = vpack.c.bf16 %v1178_v32, %v1178_v32  ;;  %v4604_v37 = vadd.f32 %v1221_v34, %v1009_v19  ;;  %1233 = vrot.lane.b32.xlu1 %v3243_v30, %s4147_s26  ;;  %v1180_v42 = vadd.f32 %v1179_v33, %v1001_v18 }
 0x309   : > { %v1181_v38 = vpop.f32.mrf.mxu0  ;;  %v3368_v39 = vpop.f32.mrf.mxu1  ;;  %3394 = vmatpush3.bf16.msra.mxu0 %v1494_v35 }
 0x30a   : > { %v1260_v40 = vsel %vm1255_vm4, %v3245_v36, 0  ;;  %v1182_v41 = vadd.f32 %v1181_v38, %v1005_v20  ;;  %1242 = vrot.lane.b32.xlu0 %v3245_v36, %s4147_s26  ;;  %3405 = vmatprep.subr.bf16.mxu0 %v4144_v27  ;;  %v3244_v44 = vpack.c.bf16 %v1180_v42, %v1180_v42  ;;  %v3248_v29 = vpack.c.bf16 %v4604_v37, %v4604_v37 }
 0x30b   : > { %3370 = vmatpush3.bf16.xpose.msra.mxu1 %v1260_v40 }
 0x30c   : > { %v3246_v43 = vpack.c.bf16 %v1182_v41, %v1182_v41  ;;  %3375 = vmatprep.subr.bf16.mxu1 %v4144_v27 }
 0x30e   : > { %1244 = vrot.lane.b32.xlu1 %v3246_v43, %s4147_s26  ;;  %v1352_v48 = vsel %vm1255_vm4, %v3246_v43, 0 }
 0x312   : > { %1235 = vrot.lane.b32.xlu1 %v3244_v44, %s4147_s26  ;;  %3372 = vmatmul.mubr.msk.bf16.vlgmr.msra.gmra.mxu1 %vm1255_vm4, %v3243_v30 }
 0x313   : > { %3377 = vmatprep.mubr.msk.bf16.mxu1 %vm4146_vm2, %v4144_v27 }
 0x37a   : > { %v1234_v47 = vpop.permute.xlu1 %1233 }
 0x37c   : > { %v1243_v45 = vpop.permute.xlu0 %1242 }
 0x37d   : > { %v1306_v46 = vsel %vm1255_vm4, %v1243_v45, 0 }
 0x37e   : > { %3376 = vmatpush3.bf16.xpose.msra.mxu1 %v1306_v46 }
 0x37f   : > { %3381 = vmatprep.subr.bf16.mxu1 %v4144_v27 }
 0x380   : > { %v1245_v49 = vpop.permute.xlu1 %1244 }
 0x381   : > { %v1398_v51 = vsel %vm1255_vm4, %v1245_v49, 0 }
 0x384   : > { %v1236_v52 = vpop.permute.xlu1 %1235 }
 0x385   : > { %3378 = vmatmul.mubr.msk.bf16.vlgmr.msra.gmra.mxu1 %vm1255_vm4, %v1234_v47 }
 0x386   : > { %3382 = vmatpush3.bf16.xpose.msra.mxu1 %v1352_v48  ;;  %3383 = vmatprep.mubr.msk.bf16.mxu1 %vm4146_vm2, %v4144_v27 }
 0x387   : > { %3387 = vmatprep.subr.bf16.mxu1 %v4144_v27 }
 0x38d   : > { %3384 = vmatmul.mubr.msk.bf16.vlgmr.msra.gmra.mxu1 %vm1255_vm4, %v3244_v44 }
 0x38e   : > { %3388 = vmatpush3.bf16.xpose.msra.mxu1 %v1398_v51  ;;  %3389 = vmatprep.mubr.msk.bf16.mxu1 %vm4146_vm2, %v4144_v27 }
 0x38f   : > { %3399 = vmatprep.subr.bf16.mxu1 %v4144_v27 }
 0x395   : > { %3390 = vmatmul.mubr.msk.bf16.vlgmr.msra.gmra.mxu1 %vm1255_vm4, %v1236_v52 }
 0x396   : > { %3401 = vmatprep.mubr.msk.bf16.mxu1 %vm4146_vm2, %v4144_v27 }
 0x3d2   : > { %v1296_v53 = vpop.f32.mrf.mxu1 }
 0x3d3   : > { %v1441_v61 = vsel %vm1440_vm5, %v1296_v53, -inf }
 0x3d4   : > { %v3373_v54 = vpop.f32.mrf.mxu1 }
 0x3d6   : > { %v1299_v55 = vpop.f32.mrf.mxu1 }
 0x3d8   : > { %v3374_v56 = vpop.f32.mrf.mxu1 }
 0x3d9   : > { %v1586_v56 = vsel %vm1492_vm3, %v3248_v29, 0 }
 0x445   : > { %v1342_v57 = vpop.f32.mrf.mxu1 }
 0x446   : > { %v1444_v58 = vsel %vm1440_vm5, %v1342_v57, -inf }
 0x447   : > { %1445 = vmax.xlane.f32.xlu0 %v1444_v58  ;;  %v3379_v59 = vpop.f32.mrf.mxu1 }
 0x448   : > { %v3606_v59 = vld [vmem:[%s4462_s28 + $0x38] sm:$0xff]  }
 0x449   : > { %v1345_v60 = vpop.f32.mrf.mxu1 }
 0x44a   : > { %v3607_v60 = vld [vmem:[%s4462_s28 + $0x30] sm:$0xff]  }
 0x44b   : > { %1442 = vmax.xlane.f32.xlu0 %v1441_v61  ;;  %v3380_v62 = vpop.f32.mrf.mxu1  ;;  %v3608_v61 = vld [vmem:[%s4462_s28 + $0x28] sm:$0xff]  }
 0x44c   : > { %v3609_v62 = vld [vmem:[%s4462_s28 + $0x20] sm:$0xff]  }
 0x44d   : > { %v1388_v63 = vpop.f32.mrf.mxu1 }
 0x44e   : > { %v1447_v0 = vsel %vm1440_vm5, %v1388_v63, -inf }
 0x44f   : > { %1448 = vmax.xlane.f32.xlu0 %v1447_v0  ;;  %v3385_v1 = vpop.f32.mrf.mxu1  ;;  %v3611_v0 = vld [vmem:[%s4462_s28 + $0x10] sm:$0xff]  }
 0x450   : > { %v3612_v1 = vld [vmem:[%s4462_s28 + $0x8] sm:$0xff]  }
 0x451   : > { %v1391_v2 = vpop.f32.mrf.mxu1 }
 0x453   : > { %v3386_v3 = vpop.f32.mrf.mxu1 }
 0x455   : > { %v1434_v4 = vpop.f32.mrf.mxu1 }
 0x456   : > { %v1450_v5 = vsel %vm1440_vm5, %v1434_v4, -inf }
 0x457   : > { %1451 = vmax.xlane.f32.xlu1 %v1450_v5  ;;  %v3391_v6 = vpop.f32.mrf.mxu1 }
 0x458   : > { %v3613_v6 = vld [vmem:[%s4462_s28] sm:$0xff]  }
 0x459   : > { %v1437_v7 = vpop.f32.mrf.mxu1 }
 0x45b   : > { %v3392_v8 = vpop.f32.mrf.mxu1 }
 0x4d0   : > { %v1446_v9 = vpop.xlane.xlu0 %1445 }
 0x4d1   : > { %v1454_v10 = vsub.f32 %v1342_v57, %v1446_v9 }
 0x4d3   : > { %v1459_v11 = vmul.f32 1.442695, %v1454_v10 }
 0x4d4   : > { %v1443_v25 = vpop.xlane.xlu0 %1442 }
 0x4d5   : > { %3698 = vpow2.f32 %v1459_v11  ;;  %v1453_v32 = vsub.f32 %v1296_v53, %v1443_v25 }
 0x4d7   : > { %v1457_v33 = vmul.f32 1.442695, %v1453_v32 }
 0x4d8   : > { %v1449_v26 = vpop.xlane.xlu0 %1448 }
 0x4d9   : > { %v1455_v28 = vsub.f32 %v1388_v63, %v1449_v26  ;;  %v3610_v63 = vld [vmem:[%s4462_s28 + $0x18] sm:$0xff]   ;;  %s4959_s28 = scalar_lea.vmem [#allocation13], %s4442_s25 }
 0x4db   : > { %v1461_v30 = vmul.f32 1.442695, %v1455_v28 }
 0x4e0   : > { %v1452_v12 = vpop.xlane.xlu1 %1451 }
 0x4e1   : > { %v1456_v16 = vsub.f32 %v1434_v4, %v1452_v12 }
 0x4e2   : > { %v3699_v18 = vpop.eup %3698 }
 0x4e3   : > { %v1463_v19 = vmul.f32 1.442695, %v1456_v16  ;;  %v1468_v20 = vsel %vm1440_vm5, %v3699_v18, 0.0 }
 0x4e4   : > { %1469 = vadd.xlane.f32.xlu0 %v1468_v20 }
 0x4e5   : > { %3700 = vpow2.f32 %v1463_v19 }
 0x4e6   : > { %3702 = vpow2.f32 %v1461_v30 }
 0x4e7   : > { %3704 = vpow2.f32 %v1457_v33 }
 0x4f2   : > { %v3701_v21 = vpop.eup %3700 }
 0x4f3   : > { %v1474_v22 = vsel %vm1440_vm5, %v3701_v21, 0.0  ;;  %v3703_v34 = vpop.eup %3702 }
 0x4f4   : > { %1475 = vadd.xlane.f32.xlu1 %v1474_v22  ;;  %v1471_v35 = vsel %vm1440_vm5, %v3703_v34, 0.0  ;;  %v3705_v36 = vpop.eup %3704 }
 0x4f5   : > { %v1465_v38 = vsel %vm1440_vm5, %v3705_v36, 0.0 }
 0x4fa   : > { %1251 = vrot.lane.b32.xlu0 %v4600_v31, %s4147_s26 }
 0x505   : > { %1253 = vrot.lane.b32.xlu1 %v3248_v29, %s4147_s26 }
 0x519   : > { %1472 = vadd.xlane.f32.xlu0 %v1471_v35 }
 0x529   : > { %1466 = vadd.xlane.f32.xlu1 %v1465_v38 }
 0x56d   : > { %v1470_v31 = vpop.xlane.xlu0 %1469 }
 0x56e   : > { %3706 = vrcp.f32 %v1470_v31 }
 0x571   : > { %v1252_v39 = vpop.permute.xlu0 %1251 }
 0x572   : > { %v1540_v37 = vsel %vm1492_vm3, %v1252_v39, 0 }
 0x573   : > { %3400 = vmatpush3.bf16.msra.mxu1 %v1540_v37 }
 0x574   : > { %3411 = vmatprep.subr.bf16.mxu1 %v4144_v27 }
 0x57b   : > { %v3707_v40 = vpop.eup %3706 }
 0x57c   : > { %v1482_v41 = vmul.f32 %v3707_v40, %v3699_v18 }
 0x57d   : > { %v1476_v42 = vpop.xlane.xlu1 %1475 }
 0x57e   : > { %3708 = vrcp.f32 %v1476_v42  ;;  %v1486_v43 = vpack.c.bf16 %v1482_v41, %v1482_v41  ;;  %v3614_v41 = vld [vmem:[%s4500_s1 + $0xe0] ss:$16 sps:$4 sm:$0xff]   ;;  %v3617_v42 = vld [vmem:[%s4500_s1 + $0xe8] ss:$16 sps:$4 sm:$0xff]  }
 0x580   : > { %3402 = vmatmul.mubr.msk.bf16.vlgmr.msra.gmra.mxu1 %vm1440_vm5, %v1486_v43  ;;  %v3619_v43 = vld [vmem:[%s4500_s1 + $0xec] ss:$16 sps:$4 sm:$0xff]  }
 0x581   : > { %v1254_v44 = vpop.permute.xlu1 %1253  ;;  %3413 = vmatprep.mubr.msk.bf16.mxu1 %vm4146_vm2, %v4144_v27 }
 0x582   : > { %v1632_v45 = vsel %vm1492_vm3, %v1254_v44, 0 }
 0x583   : > { %3412 = vmatpush3.bf16.msra.mxu1 %v1632_v45 }
 0x58b   : > { %v3709_v46 = vpop.eup %3708 }
 0x58c   : > { %v1484_v47 = vmul.f32 %v3709_v46, %v3701_v21 }
 0x58e   : > { %v1488_v48 = vpack.c.bf16 %v1484_v47, %v1484_v47 }
 0x590   : > { %3414 = vmatmul.mubr.msk.bf16.vlgmr.msra.gmra.mxu1 %vm1440_vm5, %v1488_v48 }
 0x591   : > { %2088 = vmatprep.mubr.bf16.mxu1 %v4145_v50 }
 0x5a2   : > { %v1473_v51 = vpop.xlane.xlu0 %1472 }
 0x5b2   : > { %v1467_v49 = vpop.xlane.xlu1 %1466 }
 0x5b3   : > { %3710 = vrcp.f32 %v1467_v49 }
 0x5b4   : > { %3712 = vrcp.f32 %v1473_v51  ;;  %v3622_v51 = vld [vmem:[%s4500_s1 + $0xc4] ss:$16 sps:$4 sm:$0xff]  }
 0x5c0   : > { %v3711_v52 = vpop.eup %3710 }
 0x5c1   : > { %v1481_v53 = vmul.f32 %v3711_v52, %v3705_v36  ;;  %v3713_v55 = vpop.eup %3712  ;;  %v3625_v52 = vld [vmem:[%s4500_s1 + $0xcc] ss:$16 sps:$4 sm:$0xff]  }
 0x5c2   : > { %v1483_v57 = vmul.f32 %v3713_v55, %v3703_v34  ;;  %v3150_v34 = vld [vmem:[%s4959_s28] ss:$0 sm:$0xff]  ;;  %v3628_v55 = vld [vmem:[%s4500_s1 + $0xa4] ss:$16 sps:$4 sm:$0xff]  }
 0x5c3   : > { %v1485_v54 = vpack.c.bf16 %v1481_v53, %v1481_v53  ;;  %v3620_v53 = vld [vmem:[%s4500_s1 + $0xc0] ss:$16 sps:$4 sm:$0xff]  }
 0x5c4   : > { %v1487_v58 = vpack.c.bf16 %v1483_v57, %v1483_v57  ;;  %v3626_v57 = vld [vmem:[%s4500_s1 + $0xa0] ss:$16 sps:$4 sm:$0xff]  }
 0x5c5   : > { %3396 = vmatmul.mubr.msk.bf16.vlgmr.msra.gmra.mxu0 %vm1440_vm5, %v1485_v54  ;;  %v3623_v54 = vld [vmem:[%s4500_s1 + $0xc8] ss:$16 sps:$4 sm:$0xff]  }
 0x5c6   : > { %3406 = vmatpush3.bf16.msra.mxu0 %v1586_v56  ;;  %3407 = vmatprep.mubr.msk.bf16.mxu0 %vm4146_vm2, %v4144_v27  ;;  %v3631_v56 = vld [vmem:[%s4500_s1 + $0xac] ss:$16 sps:$4 sm:$0xff]  }
 0x5c7   : > { %3417 = vmatprep.subr.bf16.mxu0 %v4144_v27 }
 0x5cd   : > { %3408 = vmatmul.mubr.msk.bf16.vlgmr.msra.gmra.mxu0 %vm1440_vm5, %v1487_v58  ;;  %v3629_v58 = vld [vmem:[%s4500_s1 + $0xa8] ss:$16 sps:$4 sm:$0xff]  }
 0x5ce   : > { %3433 = vmatprep.mubr.msk.bf16.mxu0 %vm4146_vm2, %v4144_v27  ;;  %3418 = vmatpush3.bf16.msra.mxu0 %v3606_v59  ;;  %v3632_v59 = vld [vmem:[%s4500_s1 + $0x80] ss:$16 sps:$4 sm:$0xff]  }
 0x5cf   : > { %3419 = vmatprep.subr.bf16.mxu0 %v4144_v27 }
 0x5d2   : > { %3420 = vmatpush3.bf16.msra.mxu0 %v3607_v60  ;;  %v3634_v60 = vld [vmem:[%s4500_s1 + $0x84] ss:$16 sps:$4 sm:$0xff]  }
 0x5d3   : > { %3421 = vmatprep.subr.bf16.mxu0 %v4144_v27 }
 0x5d6   : > { %3422 = vmatpush3.bf16.msra.mxu0 %v3608_v61  ;;  %v3635_v61 = vld [vmem:[%s4500_s1 + $0x88] ss:$16 sps:$4 sm:$0xff]  }
 0x5d7   : > { %3423 = vmatprep.subr.bf16.mxu0 %v4144_v27 }
 0x5da   : > { %3424 = vmatpush3.bf16.msra.mxu0 %v3609_v62  ;;  %v3637_v62 = vld [vmem:[%s4500_s1 + $0x8c] ss:$16 sps:$4 sm:$0xff]  }
 0x5db   : > { %3425 = vmatprep.subr.bf16.mxu0 %v4144_v27 }
 0x5de   : > { %3426 = vmatpush3.bf16.msra.mxu0 %v3610_v63  ;;  %v3640_v63 = vld [vmem:[%s4500_s1 + $0x64] ss:$16 sps:$4 sm:$0xff]  }
 0x5df   : > { %3427 = vmatprep.subr.bf16.mxu0 %v4144_v27 }
 0x5e2   : > { %3428 = vmatpush3.bf16.msra.mxu0 %v3611_v0  ;;  %v3643_v0 = vld [vmem:[%s4500_s1 + $0x6c] ss:$16 sps:$4 sm:$0xff]  }
 0x5e3   : > { %3429 = vmatprep.subr.bf16.mxu0 %v4144_v27 }
 0x5e6   : > { %3430 = vmatpush3.bf16.msra.mxu0 %v3612_v1  ;;  %v3638_v1 = vld [vmem:[%s4500_s1 + $0x60] ss:$16 sps:$4 sm:$0xff]  }
 0x5e7   : > { %3431 = vmatprep.subr.bf16.mxu0 %v4144_v27 }
 0x5ea   : > { %3432 = vmatpush3.bf16.msra.mxu0 %v3613_v6  ;;  %v3647_v6 = vld [vmem:[%s4500_s1 + $0x48] ss:$16 sps:$4 sm:$0xff]  }
 0x5eb   : > { %2099 = vmatprep.subr.bf16.mxu0 %v3619_v43  ;;  %v3666_v43 = vld [vmem:[%s4511_s2 + $0x70] sm:$0xff]  }
 0x640   : > { %v1576_v2 = vpop.f32.mrf.mxu1 }
 0x642   : > { %v3403_v3 = vpop.f32.mrf.mxu1 }
 0x643   : > { %v3646_v3 = vld [vmem:[%s4500_s1 + $0x44] ss:$16 sps:$4 sm:$0xff]  }
 0x644   : > { %v1579_v4 = vpop.f32.mrf.mxu1 }
 0x645   : > { %v3649_v4 = vld [vmem:[%s4500_s1 + $0x4c] ss:$16 sps:$4 sm:$0xff]  }
 0x646   : > { %v3404_v5 = vpop.f32.mrf.mxu1 }
 0x647   : > { %v3644_v5 = vld [vmem:[%s4500_s1 + $0x40] ss:$16 sps:$4 sm:$0xff]  }
 0x650   : > { %v1668_v7 = vpop.f32.mrf.mxu1 }
 0x651   : > { %v3569_v8 = vpack.i.bf16 %v1668_v7, %v1576_v2  ;;  %v3641_v2 = vld [vmem:[%s4500_s1 + $0x68] ss:$16 sps:$4 sm:$0xff]   ;;  %v3652_v7 = vld [vmem:[%s4500_s1 + $0x24] ss:$16 sps:$4 sm:$0xff]  }
 0x652   : > { %v3415_v9 = vpop.f32.mrf.mxu1 }
 0x653   : > { %3570 = vrot.lane.b32.xlu0 %v3569_v8, %s4147_s26  ;;  %v3655_v8 = vld [vmem:[%s4500_s1 + $0x2c] ss:$16 sps:$4 sm:$0xff]   ;;  %v3650_v9 = vld [vmem:[%s4500_s1 + $0x20] ss:$16 sps:$4 sm:$0xff]  }
 0x654   : > { %v1671_v10 = vpop.f32.mrf.mxu1 }
 0x655   : > { %v3653_v10 = vld [vmem:[%s4500_s1 + $0x28] ss:$16 sps:$4 sm:$0xff]  }
 0x656   : > { %v3416_v11 = vpop.f32.mrf.mxu1 }
 0x657   : > { %v3658_v11 = vld [vmem:[%s4500_s1 + $0x4] ss:$16 sps:$4 sm:$0xff]  }
 0x685   : > { %v1530_v12 = vpop.f32.mrf.mxu0 }
 0x687   : > { %v3397_v16 = vpop.f32.mrf.mxu0 }
 0x688   : > { %v3656_v16 = vld [vmem:[%s4500_s1] ss:$16 sps:$4 sm:$0xff]  }
 0x689   : > { %v1533_v18 = vpop.f32.mrf.mxu0 }
 0x68a   : > { %v3659_v18 = vld [vmem:[%s4500_s1 + $0x8] ss:$16 sps:$4 sm:$0xff]  }
 0x68b   : > { %v3398_v19 = vpop.f32.mrf.mxu0 }
 0x68d   : > { %v1622_v20 = vpop.f32.mrf.mxu0 }
 0x68f   : > { %v3409_v27 = vpop.f32.mrf.mxu0 }
 0x691   : > { %v1625_v21 = vpop.f32.mrf.mxu0 }
 0x693   : > { %v3410_v22 = vpop.f32.mrf.mxu0 }
 0x6c5   : > { %v3571_v25 = vpop.permute.xlu0 %3570 }
 0x6c6   : > { %v3573_v26 = vunpack.i.h.bf16 %v3571_v25  ;;  %v3572_v28 = vunpack.i.l.bf16 %v3571_v25 }
 0x6c8   : > { %v1683_v29 = vsel %vm1255_vm4, %v1622_v20, %v3573_v26  ;;  %v1682_v30 = vsel %vm1255_vm4, %v1530_v12, %v3572_v28  ;;  %v3661_v12 = vld [vmem:[%s4500_s1 + $0xc] ss:$16 sps:$4 sm:$0xff]  }
 0x6c9   : > { %v1684_v32 = vpack.c.bf16 %v1683_v29, %v1682_v30  ;;  %v3151_v29 = vld [vmem:[%s4960_s24] ss:$0 sm:$0xff] }
 0x6cb   : > { %3434 = vmatmul.mubr.bf16.vlgmr.msra.gmra.mxu0 %v1684_v32 }
 0x6cc   : > { %2131 = vmatprep.mubr.bf16.mxu0 %v4145_v50  ;;  %v3616_v50 = vld [vmem:[%s4500_s1 + $0xe4] ss:$16 sps:$4 sm:$0xff]   ;;  %2100 = vmatpush1.bf16.msra.mxu0 %v3617_v42  ;;  %v3665_v42 = vld [vmem:[%s4511_s2 + $0xb8] sm:$0xff]  }
 0x6cd   : > { %2056 = vmatprep.subr.bf16.mxu1 %v3616_v50  ;;  %2101 = vmatprep.subr.bf16.mxu0 %v3625_v52  ;;  %v3664_v50 = vld [vmem:[%s4511_s2 + $0x38] sm:$0xff]   ;;  %v3676_v52 = vld [vmem:[%s4511_s2 + $0x20] sm:$0xff]  }
 0x6ce   : > { %2057 = vmatpush1.bf16.msra.mxu1 %v3614_v41  ;;  %v3663_v41 = vld [vmem:[%s4511_s2 + $0xf8] sm:$0xff]  }
 0x6cf   : > { %2058 = vmatprep.subr.bf16.mxu1 %v3622_v51  ;;  %v3675_v51 = vld [vmem:[%s4511_s2 + $0xe0] sm:$0xff]  }
 0x6d0   : > { %2102 = vmatpush1.bf16.msra.mxu0 %v3623_v54  ;;  %v3678_v54 = vld [vmem:[%s4511_s2 + $0x58] sm:$0xff]  }
 0x6d1   : > { %2103 = vmatprep.subr.bf16.mxu0 %v3631_v56  ;;  %v3680_v56 = vld [vmem:[%s4511_s2 + $0x18] sm:$0xff]  }
 0x6d2   : > { %2059 = vmatpush1.bf16.msra.mxu1 %v3620_v53  ;;  %v3677_v53 = vld [vmem:[%s4511_s2 + $0xa0] sm:$0xff]  }
 0x6d3   : > { %2060 = vmatprep.subr.bf16.mxu1 %v3628_v55  ;;  %v3679_v55 = vld [vmem:[%s4511_s2 + $0xd8] sm:$0xff]  }
 0x6d4   : > { %2104 = vmatpush1.bf16.msra.mxu0 %v3629_v58  ;;  %v3682_v58 = vld [vmem:[%s4511_s2 + $0x50] sm:$0xff]  }
 0x6d5   : > { %2105 = vmatprep.subr.bf16.mxu0 %v3637_v62  ;;  %v3686_v62 = vld [vmem:[%s4511_s2 + $0x48] sm:$0xff]  }
 0x6d6   : > { %2061 = vmatpush1.bf16.msra.mxu1 %v3626_v57  ;;  %v3681_v57 = vld [vmem:[%s4511_s2 + $0x98] sm:$0xff]  }
 0x6d7   : > { %2062 = vmatprep.subr.bf16.mxu1 %v3634_v60  ;;  %v3684_v60 = vld [vmem:[%s4511_s2 + $0x10] sm:$0xff]  }
 0x6d8   : > { %2106 = vmatpush1.bf16.msra.mxu0 %v3635_v61  ;;  %v3685_v61 = vld [vmem:[%s4511_s2 + $0x90] sm:$0xff]  }
 0x6d9   : > { %2107 = vmatprep.subr.bf16.mxu0 %v3643_v0  ;;  %v3688_v0 = vld [vmem:[%s4511_s2 + $0x8] sm:$0xff]  }
 0x6da   : > { %2063 = vmatpush1.bf16.msra.mxu1 %v3632_v59  ;;  %v3683_v59 = vld [vmem:[%s4511_s2 + $0xd0] sm:$0xff]  }
 0x6db   : > { %2064 = vmatprep.subr.bf16.mxu1 %v3640_v63  ;;  %v3687_v63 = vld [vmem:[%s4511_s2 + $0xc8] sm:$0xff]  }
 0x6dc   : > { %2108 = vmatpush1.bf16.msra.mxu0 %v3641_v2  ;;  %v3690_v2 = vld [vmem:[%s4511_s2 + $0x40] sm:$0xff]  }
 0x6dd   : > { %2109 = vmatprep.subr.bf16.mxu0 %v3649_v4  ;;  %v3692_v4 = vld [vmem:[%s4511_s2] sm:$0xff]  }
 0x6de   : > { %2065 = vmatpush1.bf16.msra.mxu1 %v3638_v1  ;;  %v3689_v1 = vld [vmem:[%s4511_s2 + $0x88] sm:$0xff]  }
 0x6df   : > { %2066 = vmatprep.subr.bf16.mxu1 %v3646_v3  ;;  %v3691_v3 = vld [vmem:[%s4511_s2 + $0xc0] sm:$0xff]  }
 0x6e0   : > { %2110 = vmatpush1.bf16.msra.mxu0 %v3647_v6  ;;  %v1874_v6 = vld [vmem:[%s4506_s5] sm:$0xf] }
 0x6e1   : > { %2111 = vmatprep.subr.bf16.mxu0 %v3655_v8  ;;  %v1879_v8 = vrot.slane %v1874_v6, %v1000_v14 }
 0x6e2   : > { %2067 = vmatpush1.bf16.msra.mxu1 %v3644_v5  ;;  %v3693_v5 = vld [vmem:[%s4511_s2 + $0x80] sm:$0xff]  }
 0x6e3   : > { %2068 = vmatprep.subr.bf16.mxu1 %v3652_v7  ;;  %v1890_v7 = vsub.s32 3, %v4588_v13 }
 0x6e4   : > { %2112 = vmatpush1.bf16.msra.mxu0 %v3653_v10  ;;  %v1883_v10 = vrot.slane %v1874_v6, %v1004_v17 }
 0x6e5   : > { %2113 = vmatprep.subr.bf16.mxu0 %v3661_v12 }
 0x6e6   : > { %2069 = vmatpush1.bf16.msra.mxu1 %v3650_v9  ;;  %v1887_v9 = vrot.slane %v1874_v6, %v1008_v15 }
 0x6e7   : > { %2070 = vmatprep.subr.bf16.mxu1 %v3658_v11  ;;  %v1891_v11 = vrot.slane %v1874_v6, %v1890_v7 }
 0x6e8   : > { %2114 = vmatpush1.bf16.msra.mxu0 %v3659_v18 }
 0x6e9   : > { %3305 = vmatprep.subr.bf16.mxu0 %v3663_v41 }
 0x6ea   : > { %2071 = vmatpush1.bf16.msra.mxu1 %v3656_v16 }
 0x78b   : > { %v1783_v33 = vpop.f32.mrf.mxu0 }
 0x78c   : > { %v1790_v35 = vadd.f32 %v1783_v33, %v4522_v23 }
 0x78d   : > { %v3435_v36 = vpop.f32.mrf.mxu0 }
 0x78e   : > { %v4682_v38 = vadd.f32 %v3150_v34, %v1790_v35 }
 0x78f   : > { %v1786_v31 = vpop.f32.mrf.mxu0 }
 0x790   : > { %v1791_v39 = vadd.f32 %v1786_v31, %v4524_v24  ;;  %1803 = vadd.xlane.f32.xlu1 %v4682_v38 }
 0x791   : > { %v3436_v37 = vpop.f32.mrf.mxu0 }
 0x792   : > { %v4686_v40 = vadd.f32 %v3150_v34, %v1791_v39  ;;  %v3152_v34 = vld [vmem:[%s4961_s23] ss:$0 sm:$0xff]  ;;  %v3662_v37 = vld [vmem:[%s4511_s2 + $0x78] sm:$0xff]  }
 0x793   : > { %3283 = vmatprep.subr.bf16.mxu1 %v3662_v37 }
 0x794   : > { %1805 = vadd.xlane.f32.xlu1 %v4686_v40 }
 0x819   : > { %v1804_v23 = vpop.xlane.xlu1 %1803 }
 0x81a   : > { %v1807_v24 = vmul.f32 0.0078125, %v1804_v23  ;;  %v3667_v23 = vld [vmem:[%s4511_s2 + $0xf0] sm:$0xff]  }
 0x81c   : > { %v4694_v44 = vsub.f32 %v4682_v38, %v1807_v24  ;;  %v3668_v24 = vld [vmem:[%s4511_s2 + $0x30] sm:$0xff]  }
 0x81d   : > { %v1806_v45 = vpop.xlane.xlu1 %1805 }
 0x81e   : > { %v1808_v46 = vmul.f32 0.0078125, %v1806_v45  ;;  %v1811_v47 = vmul.f32 %v4694_v44, %v4694_v44  ;;  %v3670_v45 = vld [vmem:[%s4511_s2 + $0x68] sm:$0xff]  }
 0x820   : > { %v4699_v48 = vsub.f32 %v4686_v40, %v1808_v46  ;;  %1813 = vadd.xlane.f32.xlu1 %v1811_v47  ;;  %v3671_v46 = vld [vmem:[%s4511_s2 + $0xe8] sm:$0xff]  }
 0x821   : > { %v3672_v47 = vld [vmem:[%s4511_s2 + $0x28] sm:$0xff]  }
 0x822   : > { %v1812_v49 = vmul.f32 %v4699_v48, %v4699_v48 }
 0x824   : > { %1815 = vadd.xlane.f32.xlu1 %v1812_v49  ;;  %v3674_v49 = vld [vmem:[%s4511_s2 + $0x60] sm:$0xff]  }
 0x8a9   : > { %v1814_v19 = vpop.xlane.xlu1 %1813 }
 0x8aa   : > { %v1817_v20 = vmul.f32 0.0078125, %v1814_v19 }
 0x8ac   : > { %v1819_v27 = vadd.f32 1e-06, %v1817_v20 }
 0x8ad   : > { %v1816_v21 = vpop.xlane.xlu1 %1815 }
 0x8ae   : > { %3714 = vrsqrt.f32 %v1819_v27  ;;  %v1818_v22 = vmul.f32 0.0078125, %v1816_v21 }
 0x8b0   : > { %v1820_v25 = vadd.f32 1e-06, %v1818_v22 }
 0x8b2   : > { %3716 = vrsqrt.f32 %v1820_v25 }
 0x8bb   : > { %v3715_v26 = vpop.eup %3714 }
 0x8bc   : > { %v1823_v28 = vmul.f32 %v3715_v26, %v4694_v44  ;;  %v3669_v44 = vld [vmem:[%s4511_s2 + $0xb0] sm:$0xff]  }
 0x8be   : > { %v1831_v33 = vmul.f32 %v3151_v29, %v1823_v28 }
 0x8bf   : > { %v3717_v30 = vpop.eup %3716 }
 0x8c0   : > { %v1824_v32 = vmul.f32 %v3717_v30, %v4699_v48  ;;  %v1839_v36 = vadd.f32 %v3152_v34, %v1831_v33  ;;  %v3673_v48 = vld [vmem:[%s4511_s2 + $0xa8] sm:$0xff]   ;;  %s4962_s2 = scalar_lea.vmem [#allocation17], %s4442_s25  ;;  %s4963_s25 = sld [smem:[#allocation33_spill]] }
 0x8c2   : > { %v1832_v35 = vmul.f32 %v3151_v29, %v1824_v32 }
 0x8c4   : > { %v1840_v31 = vadd.f32 %v3152_v34, %v1832_v35 }
 0x8c6   : > { %v1841_v39 = vpack.c.bf16 %v1840_v31, %v1839_v36  ;;  %p3218_p2 = scmp.ne.s32.totalorder %s4963_s25, 1 }
 0x8c8   : > { %2089 = vmatmul.mubr.bf16.vlgmr.msra.gmra.mxu1 %v1841_v39  ;;  %2132 = vmatmul.mubr.bf16.vlgmr.msra.gmra.mxu0 %v1841_v39 }
 0x8c9   : > { %3284 = vmatpush3.bf16.msra.mxu1 %v3664_v50  ;;  %3306 = vmatpush3.bf16.msra.mxu0 %v3665_v42 }
 0x8ca   : > { %3285 = vmatprep.subr.bf16.mxu1 %v3666_v43  ;;  %3307 = vmatprep.subr.bf16.mxu0 %v3667_v23 }
 0x8cd   : > { %3286 = vmatpush3.bf16.msra.mxu1 %v3668_v24  ;;  %3308 = vmatpush3.bf16.msra.mxu0 %v3669_v44 }
 0x8ce   : > { %3287 = vmatprep.subr.bf16.mxu1 %v3670_v45  ;;  %3309 = vmatprep.subr.bf16.mxu0 %v3671_v46 }
 0x8d1   : > { %3288 = vmatpush3.bf16.msra.mxu1 %v3672_v47  ;;  %3310 = vmatpush3.bf16.msra.mxu0 %v3673_v48 }
 0x8d2   : > { %3289 = vmatprep.subr.bf16.mxu1 %v3674_v49  ;;  %3311 = vmatprep.subr.bf16.mxu0 %v3675_v51 }
 0x8d5   : > { %3290 = vmatpush3.bf16.msra.mxu1 %v3676_v52  ;;  %3312 = vmatpush3.bf16.msra.mxu0 %v3677_v53 }
 0x8d6   : > { %3291 = vmatprep.subr.bf16.mxu1 %v3678_v54  ;;  %3313 = vmatprep.subr.bf16.mxu0 %v3679_v55 }
 0x8d9   : > { %3292 = vmatpush3.bf16.msra.mxu1 %v3680_v56  ;;  %3314 = vmatpush3.bf16.msra.mxu0 %v3681_v57 }
 0x8da   : > { %3293 = vmatprep.subr.bf16.mxu1 %v3682_v58  ;;  %3315 = vmatprep.subr.bf16.mxu0 %v3683_v59 }
 0x8dd   : > { %3294 = vmatpush3.bf16.msra.mxu1 %v3684_v60  ;;  %3316 = vmatpush3.bf16.msra.mxu0 %v3685_v61 }
 0x8de   : > { %3295 = vmatprep.subr.bf16.mxu1 %v3686_v62  ;;  %3317 = vmatprep.subr.bf16.mxu0 %v3687_v63 }
 0x8e1   : > { %3296 = vmatpush3.bf16.msra.mxu1 %v3688_v0  ;;  %3318 = vmatpush3.bf16.msra.mxu0 %v3689_v1 }
 0x8e2   : > { %3297 = vmatprep.subr.bf16.mxu1 %v3690_v2  ;;  %3319 = vmatprep.subr.bf16.mxu0 %v3691_v3 }
 0x8e5   : > { %3298 = vmatpush3.bf16.msra.mxu1 %v3692_v4  ;;  %3320 = vmatpush3.bf16.msra.mxu0 %v3693_v5 }
 0x988   : > { %v2090_v12 = vpop.f32.mrf.mxu1  ;;  %v2133_v16 = vpop.f32.mrf.mxu0 }
 0x989   : > { %v4777_v18 = vadd.f32 %v2090_v12, %v1879_v8  ;;  %v4779_v19 = vadd.f32 %v2133_v16, %v1887_v9 }
 0x98a   : > { %v2092_v20 = vpop.f32.mrf.mxu1  ;;  %v2135_v27 = vpop.f32.mrf.mxu0 }
 0x98b   : > { %v2142_v21 = vmul.f32 %v4777_v18, %v4777_v18  ;;  %v2144_v14 = vmul.f32 %v4779_v19, %v4779_v19  ;;  %v4785_v22 = vadd.f32 %v2092_v20, %v1883_v10  ;;  %v4787_v15 = vadd.f32 %v2135_v27, %v1891_v11 }
 0x98c   : > { %v2094_v13 = vpop.f32.mrf.mxu1  ;;  %v2137_v17 = vpop.f32.mrf.mxu0 }
 0x98d   : > { %v2150_v25 = vmul.f32 %v2142_v21, %v4777_v18  ;;  %v2152_v26 = vmul.f32 %v2144_v14, %v4779_v19  ;;  %v2143_v28 = vmul.f32 %v4785_v22, %v4785_v22  ;;  %v2145_v29 = vmul.f32 %v4787_v15, %v4787_v15 }
 0x98e   : > { %v4795_v30 = vadd.f32 %v2094_v13, %v1879_v8  ;;  %v4797_v32 = vadd.f32 %v2137_v17, %v1887_v9  ;;  %v2096_v33 = vpop.f32.mrf.mxu1  ;;  %v2139_v34 = vpop.f32.mrf.mxu0 }
 0x98f   : > { %v2158_v35 = vmul.f32 0.044715, %v2150_v25  ;;  %v2160_v36 = vmul.f32 0.044715, %v2152_v26  ;;  %v2151_v31 = vmul.f32 %v2143_v28, %v4785_v22  ;;  %v2153_v39 = vmul.f32 %v2145_v29, %v4787_v15 }
 0x990   : > { %v2146_v37 = vmul.f32 %v4795_v30, %v4795_v30  ;;  %v2148_v41 = vmul.f32 %v4797_v32, %v4797_v32  ;;  %v4805_v50 = vadd.f32 %v2096_v33, %v1883_v10  ;;  %v4807_v42 = vadd.f32 %v2139_v34, %v1891_v11 }
 0x991   : > { %v2166_v43 = vadd.f32 %v2158_v35, %v4777_v18  ;;  %v2168_v23 = vadd.f32 %v2160_v36, %v4779_v19  ;;  %v2159_v24 = vmul.f32 0.044715, %v2151_v31  ;;  %v2161_v44 = vmul.f32 0.044715, %v2153_v39 }
 0x992   : > { %v2154_v45 = vmul.f32 %v2146_v37, %v4795_v30  ;;  %v2156_v46 = vmul.f32 %v2148_v41, %v4797_v32  ;;  %v2147_v47 = vmul.f32 %v4805_v50, %v4805_v50  ;;  %v2149_v48 = vmul.f32 %v4807_v42, %v4807_v42 }
 0x993   : > { %v2174_v49 = vmul.f32 0.7978846, %v2166_v43  ;;  %v2176_v51 = vmul.f32 0.7978846, %v2168_v23  ;;  %v2167_v52 = vadd.f32 %v2159_v24, %v4785_v22  ;;  %v2169_v53 = vadd.f32 %v2161_v44, %v4787_v15 }
 0x994   : > { %v2162_v54 = vmul.f32 0.044715, %v2154_v45  ;;  %v2164_v55 = vmul.f32 0.044715, %v2156_v46  ;;  %v2155_v56 = vmul.f32 %v2147_v47, %v4805_v50  ;;  %v2157_v57 = vmul.f32 %v2149_v48, %v4807_v42 }
 0x995   : > { %3718 = vtanh.f32 %v2174_v49  ;;  %v2175_v58 = vmul.f32 0.7978846, %v2167_v52  ;;  %v2177_v59 = vmul.f32 0.7978846, %v2169_v53 }
 0x996   : > { %3720 = vtanh.f32 %v2176_v51  ;;  %v2170_v60 = vadd.f32 %v2162_v54, %v4795_v30  ;;  %v2172_v61 = vadd.f32 %v2164_v55, %v4797_v32  ;;  %v2163_v62 = vmul.f32 0.044715, %v2155_v56 }
 0x997   : > { %3722 = vtanh.f32 %v2175_v58  ;;  %v2165_v63 = vmul.f32 0.044715, %v2157_v57 }
 0x998   : > { %3724 = vtanh.f32 %v2177_v59  ;;  %v2178_v0 = vmul.f32 0.7978846, %v2170_v60  ;;  %v2180_v1 = vmul.f32 0.7978846, %v2172_v61  ;;  %v2171_v2 = vadd.f32 %v2163_v62, %v4805_v50 }
 0x999   : > { %v2173_v3 = vadd.f32 %v2165_v63, %v4807_v42 }
 0x99a   : > { %3726 = vtanh.f32 %v2178_v0  ;;  %v2179_v4 = vmul.f32 0.7978846, %v2171_v2  ;;  %v2567_v2 = vld [vmem:[#allocation3] sm:$0x3] }
 0x99b   : > { %3728 = vtanh.f32 %v2180_v1  ;;  %v2181_v5 = vmul.f32 0.7978846, %v2173_v3 }
 0x99c   : > { %3730 = vtanh.f32 %v2179_v4 }
 0x99d   : > { %3732 = vtanh.f32 %v2181_v5 }
 0x9a2   : > { %v3719_v6 = vpop.eup %3718 }
 0x9a3   : > { %v3721_v7 = vpop.eup %3720  ;;  %v2190_v12 = vadd.f32 1.0, %v3719_v6 }
 0x9a4   : > { %v3723_v8 = vpop.eup %3722  ;;  %v2192_v27 = vadd.f32 1.0, %v3721_v7 }
 0x9a5   : > { %v3725_v9 = vpop.eup %3724  ;;  %v2191_v10 = vadd.f32 1.0, %v3723_v8  ;;  %v2198_v29 = vmul.f32 0.5, %v2190_v12 }
 0x9a6   : > { %v2193_v16 = vadd.f32 1.0, %v3725_v9  ;;  %v2200_v36 = vmul.f32 0.5, %v2192_v27 }
 0x9a7   : > { %v3727_v11 = vpop.eup %3726  ;;  %v2199_v28 = vmul.f32 0.5, %v2191_v10  ;;  %v2206_v24 = vmul.f32 %v2198_v29, %v4777_v18 }
 0x9a8   : > { %v3729_v20 = vpop.eup %3728  ;;  %v2194_v21 = vadd.f32 1.0, %v3727_v11  ;;  %v2201_v35 = vmul.f32 0.5, %v2193_v16  ;;  %v2208_v46 = vmul.f32 %v2200_v36, %v4779_v19 }
 0x9a9   : > { %v3731_v14 = vpop.eup %3730  ;;  %v2196_v13 = vadd.f32 1.0, %v3729_v20  ;;  %v2207_v43 = vmul.f32 %v2199_v28, %v4785_v22 }
 0x9aa   : > { %v3733_v17 = vpop.eup %3732  ;;  %v2202_v25 = vmul.f32 0.5, %v2194_v21  ;;  %v2195_v26 = vadd.f32 1.0, %v3731_v14  ;;  %v2209_v44 = vmul.f32 %v2201_v35, %v4787_v15 }
 0x9ab   : > { %v2204_v33 = vmul.f32 0.5, %v2196_v13  ;;  %v2197_v34 = vadd.f32 1.0, %v3733_v17  ;;  %v2576_v13 = vld [vmem:[#allocation4] sm:$0x3] }
 0x9ac   : > { %v2203_v31 = vmul.f32 0.5, %v2195_v26  ;;  %v2210_v39 = vmul.f32 %v2202_v25, %v4795_v30 }
 0x9ad   : > { %v2205_v37 = vmul.f32 0.5, %v2197_v34  ;;  %v2212_v41 = vmul.f32 %v2204_v33, %v4797_v32 }
 0x9ae   : > { %v2211_v23 = vmul.f32 %v2203_v31, %v4805_v50  ;;  %v2214_v49 = vpack.c.bf16 %v2210_v39, %v2206_v24  ;;  %v3185_v50 = vld [vmem:[%s4962_s2] ss:$0 sm:$0xff] }
 0x9af   : > { %v2213_v45 = vmul.f32 %v2205_v37, %v4807_v42  ;;  %v2216_v30 = vpack.c.bf16 %v2212_v41, %v2208_v46 }
 0x9b0   : > { %v2215_v47 = vpack.c.bf16 %v2211_v23, %v2207_v43 }
 0x9b1   : > { %v2217_v48 = vpack.c.bf16 %v2213_v45, %v2209_v44 }
 0x9b2   : > { %2513 = vmatprep.mubr.bf16.mxu1 %v2215_v47 }
 0x9b3   : > { %2554 = vmatprep.mubr.bf16.mxu0 %v2217_v48  ;;  %2514 = vmatmul.mubr.bf16.vlgmr.msra.gmra.mxu1 %v2214_v49 }
 0x9b4   : > { %2555 = vmatmul.mubr.bf16.vlgmr.msra.gmra.mxu0 %v2216_v30 }
 0xa73   : > { %v3299_v22 = vpop.f32.mrf.mxu1 }
 0xa74   : > { %v3321_v32 = vpop.f32.mrf.mxu0 }
 0xa75   : > { %v3300_v51 = vpop.f32.mrf.mxu1 }
 0xa76   : > { %v3301_v18 = vadd.f32 %v3300_v51, %v3299_v22  ;;  %v3322_v52 = vpop.f32.mrf.mxu0 }
 0xa77   : > { %v3302_v15 = vpop.f32.mrf.mxu1  ;;  %v3323_v42 = vadd.f32 %v3322_v52, %v3321_v32 }
 0xa78   : > { %v2516_v53 = vadd.f32 %v3301_v18, %v3185_v50  ;;  %v3324_v54 = vpop.f32.mrf.mxu0 }
 0xa79   : > { %v3303_v19 = vpop.f32.mrf.mxu1 }
 0xa7a   : > { %v2557_v55 = vadd.f32 %v3323_v42, %v2516_v53  ;;  %v3304_v56 = vadd.f32 %v3303_v19, %v3302_v15  ;;  %v3325_v57 = vpop.f32.mrf.mxu0 }
 0xa7b   : > { %v3326_v60 = vadd.f32 %v3325_v57, %v3324_v54 }
 0xa7c   : > { %v2563_v58 = vadd.f32 %v2557_v55, %v4682_v38  ;;  %v2519_v59 = vadd.f32 %v3304_v56, %v3185_v50 }
 0xa7e   : > { %2565 = vst [vmem:[#allocation2] sm:$0xff] %v2563_v58  ;;  %v2577_v61 = vrot.slane %v2563_v58, 4  ;;  %v2560_v62 = vadd.f32 %v3326_v60, %v2519_v59 }
 0xa80   : > { %v2581_v63 = vsel %vm1492_vm3, %v2577_v61, 0.0  ;;  %v2564_v0 = vadd.f32 %v2560_v62, %v4686_v40 }
 0xa81   : > { %v2582_v1 = vrot.slane %v2581_v63, 4 }
 0xa82   : > { %2566 = vst [vmem:[#allocation2 + $0x8] sm:$0xff] %v2564_v0  ;;  %v2570_v3 = vrot.slane %v2564_v0, 7  ;;  %v2578_v4 = vrot.slane %v2564_v0, 4 }
 0xa83   : > { %v2583_v5 = vadd.f32 %v2582_v1, %v2581_v63 }
 0xa84   : > { %v2572_v6 = vsel %vm2571_vm6, %v2570_v3, %v2563_v58  ;;  %v2588_v38 = vsel %vm1492_vm3, %v2578_v4, 0.0 }
 0xa85   : > { %v2584_v7 = vrot.slane %v2583_v5, 2  ;;  %v2574_v8 = vadd.f32 %v2572_v6, %v2567_v2  ;;  %v2589_v9 = vrot.slane %v2588_v38, 4 }
 0xa87   : > { %v2585_v10 = vadd.f32 %v2584_v7, %v2583_v5  ;;  %2575 = vst [vmem:[#allocation3] sm:$0x3] %v2574_v8  ;;  %v2590_v11 = vadd.f32 %v2589_v9, %v2588_v38 }
 0xa89   : > { %v2586_v12 = vrot.slane %v2585_v10, 1  ;;  %v2591_v16 = vrot.slane %v2590_v11, 2 }
 0xa8b   : > { %v2592_v40 = vadd.f32 %v2591_v16, %v2590_v11  ;;  %v2587_v20 = vadd.f32 %v2586_v12, %v2585_v10 }
 0xa8d   : > { %v2593_v27 = vrot.slane %v2592_v40, 1  ;;  %v2596_v14 = vmul.f32 0.25, %v2587_v20 }
 0xa8f   : > { %v2594_v21 = vadd.f32 %v2593_v27, %v2592_v40 }
 0xa91   : > { %v2597_v17 = vmul.f32 0.25, %v2594_v21 }
 0xa92   : > { %2607 = sbr.rel (%p3218_p2) target bundleno = 2944 (0xb80), region = 128 }
 0xa93   : > { %v2600_v25 = vsel %vm2571_vm6, %v2597_v17, %v2596_v14 }
 0xa94   : > { %v2602_v26 = vadd.f32 %v2600_v25, %v2576_v13 }
 0xa96   : > { %2603 = vst [vmem:[#allocation4] sm:$0x3] %v2602_v26 }
 0xa97   : > { %v3734_v28 = vld [vmem:[#allocation19 + $0x78] sm:$0xff]   ;;  %v3736_v33 = vld [vmem:[#allocation19 + $0x70] sm:$0xff]   ;;  %v3738_v35 = vld [vmem:[#allocation19 + $0x68] sm:$0xff]  }
 0xa98   : > { %v3735_v29 = vld [vmem:[#allocation19 + $0x38] sm:$0xff]   ;;  %3327 = vmatprep.subr.bf16.mxu0 %v3734_v28  ;;  %v3737_v34 = vld [vmem:[#allocation19 + $0x30] sm:$0xff]   ;;  %v3739_v36 = vld [vmem:[#allocation19 + $0x28] sm:$0xff]  }
 0xa99   : > { %3328 = vmatpush3.bf16.msra.mxu0 %v3735_v29  ;;  %v3740_v31 = vld [vmem:[#allocation19 + $0x60] sm:$0xff]   ;;  %v3742_v37 = vld [vmem:[#allocation19 + $0x58] sm:$0xff]   ;;  %v3744_v43 = vld [vmem:[#allocation19 + $0x50] sm:$0xff]  }
 0xa9a   : > { %3329 = vmatprep.subr.bf16.mxu0 %v3736_v33  ;;  %v3741_v39 = vld [vmem:[#allocation19 + $0x20] sm:$0xff]   ;;  %v3743_v41 = vld [vmem:[#allocation19 + $0x18] sm:$0xff]   ;;  %v3745_v44 = vld [vmem:[#allocation19 + $0x10] sm:$0xff]  }
 0xa9b   : > { %v3746_v46 = vld [vmem:[#allocation19 + $0x48] sm:$0xff]   ;;  %v3748_v49 = vld [vmem:[#allocation19 + $0x40] sm:$0xff]  }
 0xa9c   : > { %v3747_v47 = vld [vmem:[#allocation19 + $0x8] sm:$0xff]   ;;  %v3749_v22 = vld [vmem:[#allocation19] sm:$0xff]  }
 0xa9d   : > { %3330 = vmatpush3.bf16.msra.mxu0 %v3737_v34  ;;  %v2609_v23 = vld [vmem:[#allocation4] sm:$0x3]  ;;  %v2608_v48 = vld [vmem:[#allocation3] sm:$0x3]  ;;  %v3219_v51 = vld [vmem:[#allocation20] ss:$0 sm:$0xff] }
 0xa9e   : > { %3331 = vmatprep.subr.bf16.mxu0 %v3738_v35  ;;  %v2611_v24 = vmul.f32 0.33333334, %v2609_v23  ;;  %v2610_v30 = vmul.f32 0.33333334, %v2608_v48 }
 0xaa0   : > { %v2613_v45 = vpack.c.bf16 %v2611_v24, %v2611_v24  ;;  %v2612_v32 = vpack.c.bf16 %v2610_v30, %v2610_v30 }
 0xaa1   : > { %3332 = vmatpush3.bf16.msra.mxu0 %v3739_v36 }
 0xaa2   : > { %3333 = vmatprep.subr.bf16.mxu0 %v3740_v31  ;;  %2781 = vmatprep.mubr.bf16.mxu0 %v2613_v45 }
 0xaa5   : > { %3334 = vmatpush3.bf16.msra.mxu0 %v3741_v39 }
 0xaa6   : > { %3335 = vmatprep.subr.bf16.mxu0 %v3742_v37 }
 0xaa9   : > { %3336 = vmatpush3.bf16.msra.mxu0 %v3743_v41 }
 0xaaa   : > { %3337 = vmatprep.subr.bf16.mxu0 %v3744_v43 }
 0xaad   : > { %3338 = vmatpush3.bf16.msra.mxu0 %v3745_v44 }
 0xaae   : > { %3339 = vmatprep.subr.bf16.mxu0 %v3746_v46 }
 0xab1   : > { %3340 = vmatpush3.bf16.msra.mxu0 %v3747_v47 }
 0xab2   : > { %3341 = vmatprep.subr.bf16.mxu0 %v3748_v49 }
 0xab5   : > { %3342 = vmatpush3.bf16.msra.mxu0 %v3749_v22 }
 0xab8   : > { %2782 = vmatmul.mubr.bf16.vlgmr.msra.gmra.mxu0 %v2612_v32 }
 0xb78   : > { %v3343_v50 = vpop.f32.mrf.mxu0 }
 0xb7a   : > { %v3344_v18 = vpop.f32.mrf.mxu0 }
 0xb7b   : > { %v3345_v52 = vadd.f32 %v3344_v18, %v3343_v50 }
 0xb7c   : > { %v3346_v15 = vpop.f32.mrf.mxu0 }
 0xb7d   : > { %v2784_v53 = vadd.f32 %v3345_v52, %v3219_v51 }
 0xb7e   : > { %v3347_v42 = vpop.f32.mrf.mxu0 }
 0xb7f   : > { %2789 = vst [vmem:[#allocation22] sm:$0x3] %v2784_v53 }
 0xb80 PF: > { %s4964_s5 = sld [smem:[#allocation35_spill]]  ;;  %s4148_s16 = smov [#allocation22]  }
 0xb81   : > { %s2799_s17 = sshll.u32 %s4148_s16, 4  ;;  %s2800_s17 = int_to_ptr.vmem [resolvable:$true] %s2799_s17 }
 0xb82   : > { %s4026_s27 = scalar_lea.vmem %s2800_s17, 32  ;;  %p4033_p4 = scmp.lt.s32.totalorder %s2800_s17, %s2800_s17 }
 0xb83   : > { %p4027_p7 = scmp.ne.s32.totalorder %s2800_s17, %s4026_s27  ;;  %p4034_p1 = scmp.lt.s32.totalorder %s4026_s27, %s4026_s27 }
 0xb85   : > { %p4035_p8 = por %p4034_p1, %p4033_p4 }
 0xb86   : > { %p3508_p5 = scmp.eq.s32.totalorder %s4964_s5, 1 }
 0xb88   : > { %p4028_p9 = pnand %p4027_p7, %p3508_p5 }
 0xb8a   : > { %p4029_p3 = pneg %p4028_p9 }
 0xb8c   : > { %p4036_p12 = pnand %p4035_p8, %p4029_p3 }
 0xb8e   : > { %4039 = shalt.err (!%p4036_p12)
}
 0xb8f   : > { %s4965_s3 = sld [smem:[#allocation49_spill]] }
 0xb95   : > { %3468 = dma.vmem_to_hbm [thread:$0]  (%p3508_p5), %s2800_s17, 32, %s4965_s3, [#allocation7]  }
 0xb96   : > { %4103 = dma.done.wait (%p3508_p5), [#allocation7], 32  }
 0xb97   : > { %4105 = vsyncadd (%p3508_p5), [#allocation7], 4294967264 }
 0xb98 PF: > { %s4966_s21 = sld [smem:[#allocation34_spill]] }
 0xb99   : > { %s4967_s18 = sld [smem:[#allocation31_spill]] }
 0xb9a   : > { %s4968_s19 = sld [smem:[#allocation32_spill]] }
 0xb9b   : > { %s4969_s20 = sld [smem:[#allocation39_spill]] }
 0xb9c   : > { %s4970_s0 = sld [smem:[#allocation38_spill]] }
 0xb9e   : > { %s42_s23 = sadd.s32 1, %s4966_s21   ;;  %s4971_s21 = smov %s4124_s22 }
 0xb9f   : > { %p39_p6 = scmp.ge.s32.totalorder %s42_s23, 4  }
 0xba1   :  { %41 = sbr.rel (!%p39_p6) target bundleno = 25 (0x19), region = 234 }
 0xba2   : > { %s4972_s22 = smov %s4970_s0 }
 0xba6   :  { %2812 = vsyncpa [#allocation6], 1 }
 0xba7   :  { %2814 = vsyncpa [#allocation6 + $0x1], 1 }
 0xba8   :  { %2815 = vsyncpa [#allocation9], 1 }
 0xba9   :  { %2817 = vsyncpa [#allocation9 + $0x1], 1 }
 0xbaa   :  { %2818 = vsyncpa [#allocation12], 1 }
 0xbab   :  { %2820 = vsyncpa [#allocation12 + $0x1], 1 }
 0xbac   :  { %2821 = vsyncpa [#allocation15], 1 }
 0xbad   :  { %2823 = vsyncpa [#allocation15 + $0x1], 1 }
 0xbae   :  { %2824 = vsyncpa [#allocation18], 1 }
 0xbaf   :  { %2826 = vsyncpa [#allocation18 + $0x1], 1 }
 0xbb0   :  { %2827 = vsyncpa [#allocation21], 1 }
 0xbb1   :  { %2828 = vsyncpa [#allocation7], 1 }
 0xbb2   :  { %2830 = vsyncpa [#allocation7 + $0x1], 1 }

</bundles_post_ra>
